<compile_context>
chip_gen: v7x
topology: tpu7x:2x2x1
jax: 0.10.0
libtpu: 0.0.40
codegen_flags: <defaults>
</compile_context>

<pallas_src>
import functools

import jax
import jax.numpy as jnp
import numpy as np
from jax import lax
from jax.experimental import pallas as pl
from jax.experimental.pallas import tpu as pltpu

_LN_EPS = 1e-5


def _layer_norm(x, gamma, beta):
    # Two-pass LayerNorm (PyTorch nn.LayerNorm semantics: biased variance).
    inv_d = 1.0 / x.shape[-1]
    mean = jnp.sum(x, axis=-1, keepdims=True) * inv_d
    xc = x - mean
    var = jnp.sum(xc * xc, axis=-1, keepdims=True) * inv_d
    return xc * lax.rsqrt(var + _LN_EPS) * gamma + beta


def _bf16_softmax_exp_ok():
    # bf16 EUP exp exists on v6e/v7x; keep softmax exp in f32 on v5e/older.
    try:
        kind = jax.devices()[0].device_kind.lower()
    except Exception:
        return False
    return ("v6" in kind) or ("v7" in kind) or ("7x" in kind)


def transformer_layer_kernel(
    hq_ref, kT_ref, v_ref,
    wq_ref, wo_ref,
    ln1g_ref, ln1b_ref,
    w1_ref, b1_ref, w2_ref, b2_ref,
    ln2g_ref, ln2b_ref,
    out_ref,
    *, n_head, d_head, ff_chunk, bf16_exp,
):
    f32 = jnp.float32
    bf16 = jnp.bfloat16

    hq_f32 = hq_ref[0].astype(f32)                                   # (TQ, D)
    hq_bf = hq_f32.astype(bf16)

    # --- fused, pre-scaled Q projection: one (TQ, D) @ (D, H*Dh) matmul ---
    q_all = jnp.dot(hq_bf, wq_ref[...],
                    preferred_element_type=f32).astype(bf16)         # (TQ, H*Dh)

    # --- per-head attention; K is stored transposed (Dh, S): plain NN matmul ---
    av_heads = []
    for hd in range(n_head):
        q_h = q_all[:, hd * d_head:(hd + 1) * d_head]                # (TQ, Dh)
        s = jnp.dot(q_h, kT_ref[0, hd], preferred_element_type=f32)  # (TQ, S)
        m = jnp.max(s, axis=-1, keepdims=True)
        sm = s - m
        e = jnp.exp(sm.astype(bf16)) if bf16_exp else jnp.exp(sm)
        denom = jnp.sum(e.astype(f32), axis=-1, keepdims=True)
        # Normalize after the AV matmul (identical softmax, p never materialized).
        av_h = jnp.dot(e.astype(bf16), v_ref[0, hd],
                       preferred_element_type=f32)                   # (TQ, Dh)
        av_heads.append(av_h * pl.reciprocal(denom, approx=True))

    # --- single fused output projection at full contraction depth H*Dh ---
    av = jnp.concatenate(av_heads, axis=-1).astype(bf16)             # (TQ, H*Dh)
    attn_out = jnp.dot(av, wo_ref[...], preferred_element_type=f32)  # (TQ, D)

    # residual + post-LayerNorm (attention block)
    o1 = _layer_norm(hq_f32 + attn_out, ln1g_ref[...], ln1b_ref[...])

    # --- position-wise FF: Linear -> ReLU -> Linear, chunked over d_inner ---
    o1_bf = o1.astype(bf16)
    d_inner = w1_ref.shape[1]
    y = jnp.zeros_like(o1)
    for c in range(d_inner // ff_chunk):
        lo = c * ff_chunk
        z = jnp.dot(o1_bf, w1_ref[:, lo:lo + ff_chunk],
                    preferred_element_type=f32) + b1_ref[:, lo:lo + ff_chunk]
        z = jnp.maximum(z, 0.0)
        y = y + jnp.dot(z.astype(bf16), w2_ref[lo:lo + ff_chunk, :],
                        preferred_element_type=f32)
    y = y + b2_ref[...]

    # residual + post-LayerNorm (FF block)
    o2 = _layer_norm(o1 + y, ln2g_ref[...], ln2b_ref[...])
    out_ref[0] = o2.astype(out_ref.dtype)


def transformer_layer(h, params, *, n_head, d_head, q_tile=None,
                      ff_chunk=None, vmem_limit_bytes=None):
    B, S, D = h.shape
    d_inner = params["w1"].shape[1]
    if q_tile is None:
        q_tile = S if S <= 256 else 256
    assert S % q_tile == 0 and (q_tile == S or q_tile % 8 == 0)
    n_qt = S // q_tile
    if ff_chunk is None:
        ff_chunk = min(d_inner, 2048)
    assert d_inner % ff_chunk == 0

    bf16 = jnp.bfloat16
    scale = 1.0 / (d_head ** 0.5)

    # --- weight prep: bf16 MXU operands, softmax scale folded into Wq ---
    wq = (params["wq"] * scale).astype(bf16)          # (D, H*Dh)
    wo = params["wo"].astype(bf16)                    # (H*Dh, D)
    w1 = params["w1"].astype(bf16)
    w2 = params["w2"].astype(bf16)

    # --- K/V projection hoisted to XLA (full-batch, full MXU width) ---
    h_bf = h.astype(bf16)
    k = jnp.matmul(h_bf, params["wk"].astype(bf16),
                   preferred_element_type=jnp.float32)
    v = jnp.matmul(h_bf, params["wv"].astype(bf16),
                   preferred_element_type=jnp.float32)
    kT = k.reshape(B, S, n_head, d_head).transpose(0, 2, 3, 1).astype(bf16)  # (B,H,Dh,S)
    vh = v.reshape(B, S, n_head, d_head).transpose(0, 2, 1, 3).astype(bf16)  # (B,H,S,Dh)

    weights = (wq, wo,
               params["ln1_g"], params["ln1_b"],
               w1, params["b1"], w2, params["b2"],
               params["ln2_g"], params["ln2_b"])

    # --- VMEM budget derived from actual buffer sizes (cap: 64 MiB = v7x) ---
    def nbytes(x):
        return int(np.prod(x.shape)) * jnp.dtype(x.dtype).itemsize
    est = sum(nbytes(w) for w in weights)                          # single-buffered weights
    est += 2 * 2 * q_tile * D * jnp.dtype(h.dtype).itemsize        # hq + out tiles (x2 buf)
    est += 2 * (n_head * d_head * S * 2)                           # kT + vh (bf16, 1 buf)
    est += 4 * 4 * q_tile * max(S, D, ff_chunk)                    # f32 live temporaries
    if vmem_limit_bytes is None:
        vmem_limit_bytes = min(max(2 * est, 16 * 2 ** 20), 64 * 2 ** 20)

    bf16_exp = _bf16_softmax_exp_ok()

    def make_in_specs(single_buffer):
        def const_spec(w):
            zeros = (0,) * w.ndim
            idx = lambda b, qi, _z=zeros: _z
            if single_buffer:
                return pl.BlockSpec(w.shape, idx, pipeline_mode=pl.Buffered(1))
            return pl.BlockSpec(w.shape, idx)

        def batch_spec(shape):
            tail = (0,) * (len(shape) - 1)
            idx = lambda b, qi, _t=tail: (b,) + _t
            blk = (1,) + shape[1:]
            if single_buffer:
                return pl.BlockSpec(blk, idx, pipeline_mode=pl.Buffered(1))
            return pl.BlockSpec(blk, idx)

        return [
            pl.BlockSpec((1, q_tile, D), lambda b, qi: (b, qi, 0)),  # query tile (f32)
            batch_spec(kT.shape),                                    # K^T per batch (bf16)
            batch_spec(vh.shape),                                    # V  per batch (bf16)
        ] + [const_spec(w) for w in weights]

    def build_and_run(single_buffer):
        return pl.pallas_call(
            functools.partial(transformer_layer_kernel, n_head=n_head,
                              d_head=d_head, ff_chunk=ff_chunk,
                              bf16_exp=bf16_exp),
            out_shape=jax.ShapeDtypeStruct((B, S, D), h.dtype),
            grid=(B, n_qt),
            in_specs=make_in_specs(single_buffer),
            out_specs=pl.BlockSpec((1, q_tile, D), lambda b, qi: (b, qi, 0)),
            compiler_params=pltpu.CompilerParams(
                dimension_semantics=("parallel", "parallel"),
                vmem_limit_bytes=int(vmem_limit_bytes)),
        )(h, kT, vh, *weights)

    # Prefer single-buffered constant / per-batch blocks (largest VMEM reclaim,
    # mandatory headroom on v7x); fall back to default double-buffering if this
    # Pallas build rejects pipeline_mode=pl.Buffered(1).
    try:
        return build_and_run(True)
    except Exception:
        return build_and_run(False)


def init_params(key, n_head, d_model, d_head, d_inner):
    # Matches the PyTorch init: q/k/v/o ~ N(0, 1/sqrt(d_head)) with bias=False;
    # FF linears ~ N(0, 1/sqrt(d_model)) with zero bias; LayerNorm gamma=1, beta=0.
    ks = jax.random.split(key, 6)
    attn_std = 1.0 / (d_head ** 0.5)
    ff_std = 1.0 / (d_model ** 0.5)
    f32 = jnp.float32
    # Canonical f32 params stored pre-transposed [in, out] so x @ W applies.
    return {
        "wq": (attn_std * jax.random.normal(ks[0], (d_model, n_head * d_head))).astype(f32),
        "wk": (attn_std * jax.random.normal(ks[1], (d_model, n_head * d_head))).astype(f32),
        "wv": (attn_std * jax.random.normal(ks[2], (d_model, n_head * d_head))).astype(f32),
        "wo": (attn_std * jax.random.normal(ks[3], (n_head * d_head, d_model))).astype(f32),
        "ln1_g": jnp.ones((1, d_model), f32),
        "ln1_b": jnp.zeros((1, d_model), f32),
        "w1": (ff_std * jax.random.normal(ks[4], (d_model, d_inner))).astype(f32),
        "b1": jnp.zeros((1, d_inner), f32),
        "w2": (ff_std * jax.random.normal(ks[5], (d_inner, d_model))).astype(f32),
        "b2": jnp.zeros((1, d_model), f32),
        "ln2_g": jnp.ones((1, d_model), f32),
        "ln2_b": jnp.zeros((1, d_model), f32),
    }


def reference_forward(h, params, *, n_head, d_head):
    """Pure-JAX f32 reference mirroring the PyTorch forward (eval, no mask/mems)."""
    B, Q, D = h.shape
    scale = 1.0 / (d_head ** 0.5)

    def ln(x, g, b):
        m = jnp.mean(x, axis=-1, keepdims=True)
        v = jnp.mean((x - m) ** 2, axis=-1, keepdims=True)
        return (x - m) * lax.rsqrt(v + _LN_EPS) * g + b

    q = (h @ params["wq"]).reshape(B, Q, n_head, d_head)
    k = (h @ params["wk"]).reshape(B, Q, n_head, d_head)
    v = (h @ params["wv"]).reshape(B, Q, n_head, d_head)
    s = jnp.einsum("bind,bjnd->bijn", q, k) * scale
    p = jax.nn.softmax(s, axis=2)
    av = jnp.einsum("bijn,bjnd->bind", p, v).reshape(B, Q, n_head * d_head)
    o1 = ln(h + av @ params["wo"], params["ln1_g"][0], params["ln1_b"][0])
    ff = jnp.maximum(o1 @ params["w1"] + params["b1"][0], 0.0)
    ff = ff @ params["w2"] + params["b2"][0]
    return ln(o1 + ff, params["ln2_g"][0], params["ln2_b"][0])


if __name__ == "__main__":
    n_head, d_model, d_head, d_inner = 4, 32, 8, 64
    B, Q, TQ = 2, 32, 16   # 2 q-tiles per batch element exercises the tiling path

    key = jax.random.PRNGKey(0)
    k_x, k_p = jax.random.split(key)
    x = jax.random.normal(k_x, (B, Q, d_model), dtype=jnp.float32)
    params = init_params(k_p, n_head, d_model, d_head, d_inner)

    out = transformer_layer(x, params, n_head=n_head, d_head=d_head, q_tile=TQ)
    out = jax.block_until_ready(out)

    ref = reference_forward(x, params, n_head=n_head, d_head=d_head)
    # Kernel matmuls use bf16 operands (f32 accumulation), so tolerance is
    # loosened relative to the pure-f32 reference.
    np.testing.assert_allclose(np.asarray(out), np.asarray(ref), atol=5e-2, rtol=5e-2)

    print("KERNEL_OK")
</pallas_src>

<mosaic_0001>
module attributes {stable_mosaic.version = 11 : i64} {
  func.func @transformer_layer_kernel(%arg0: i32, %arg1: i32, %arg2: memref<1x16x32xf32, #tpu.memory_space<vmem>>, %arg3: memref<1x4x8x32xbf16, #tpu.memory_space<vmem>>, %arg4: memref<1x4x32x8xbf16, #tpu.memory_space<vmem>>, %arg5: memref<32x32xbf16, #tpu.memory_space<vmem>>, %arg6: memref<32x32xbf16, #tpu.memory_space<vmem>>, %arg7: memref<1x32xf32, #tpu.memory_space<vmem>>, %arg8: memref<1x32xf32, #tpu.memory_space<vmem>>, %arg9: memref<32x64xbf16, #tpu.memory_space<vmem>>, %arg10: memref<1x64xf32, #tpu.memory_space<vmem>>, %arg11: memref<64x32xbf16, #tpu.memory_space<vmem>>, %arg12: memref<1x32xf32, #tpu.memory_space<vmem>>, %arg13: memref<1x32xf32, #tpu.memory_space<vmem>>, %arg14: memref<1x32xf32, #tpu.memory_space<vmem>>, %arg15: memref<1x16x32xf32, #tpu.memory_space<vmem>>) attributes {dimension_semantics = [#tpu.dimension_semantics<parallel>, #tpu.dimension_semantics<parallel>], iteration_bounds = array<i64: 2, 2>, scalar_prefetch = 0 : i64, scratch_operands = 0 : i64, tpu.core_type = #tpu.core_type<tc>, window_params = [{transform_indices = @transform_0, window_bounds = array<i64: 1, 16, 32>}, {pipeline_mode = #tpu.pipeline_mode<synchronous>, transform_indices = @transform_1, window_bounds = array<i64: 1, 4, 8, 32>}, {pipeline_mode = #tpu.pipeline_mode<synchronous>, transform_indices = @transform_2, window_bounds = array<i64: 1, 4, 32, 8>}, {pipeline_mode = #tpu.pipeline_mode<synchronous>, transform_indices = @transform_3, window_bounds = array<i64: 32, 32>}, {pipeline_mode = #tpu.pipeline_mode<synchronous>, transform_indices = @transform_4, window_bounds = array<i64: 32, 32>}, {pipeline_mode = #tpu.pipeline_mode<synchronous>, transform_indices = @transform_5, window_bounds = array<i64: 1, 32>}, {pipeline_mode = #tpu.pipeline_mode<synchronous>, transform_indices = @transform_6, window_bounds = array<i64: 1, 32>}, {pipeline_mode = #tpu.pipeline_mode<synchronous>, transform_indices = @transform_7, window_bounds = array<i64: 32, 64>}, {pipeline_mode = #tpu.pipeline_mode<synchronous>, transform_indices = @transform_8, window_bounds = array<i64: 1, 64>}, {pipeline_mode = #tpu.pipeline_mode<synchronous>, transform_indices = @transform_9, window_bounds = array<i64: 64, 32>}, {pipeline_mode = #tpu.pipeline_mode<synchronous>, transform_indices = @transform_10, window_bounds = array<i64: 1, 32>}, {pipeline_mode = #tpu.pipeline_mode<synchronous>, transform_indices = @transform_11, window_bounds = array<i64: 1, 32>}, {pipeline_mode = #tpu.pipeline_mode<synchronous>, transform_indices = @transform_12, window_bounds = array<i64: 1, 32>}, {transform_indices = @transform_13, window_bounds = array<i64: 1, 16, 32>}]} {
    %c0 = arith.constant 0 : index
    %c0_0 = arith.constant 0 : index
    %c0_1 = arith.constant 0 : index
    %0 = vector.load %arg2[%c0, %c0_0, %c0_1] : memref<1x16x32xf32, #tpu.memory_space<vmem>>, vector<1x16x32xf32>
    %1 = vector.shape_cast %0 : vector<1x16x32xf32> to vector<16x32xf32>
    %2 = arith.truncf %1 : vector<16x32xf32> to vector<16x32xbf16>
    %c0_2 = arith.constant 0 : index
    %c0_3 = arith.constant 0 : index
    %3 = vector.load %arg5[%c0_2, %c0_3] : memref<32x32xbf16, #tpu.memory_space<vmem>>, vector<32x32xbf16>
    %cst = arith.constant dense<0.000000e+00> : vector<16x32xf32>
    %4 = tpu.matmul %2, %3, %cst {dimension_numbers = #tpu.dot_dimension_numbers<[1], [0], [0], [1], [0, 0, 1, 1], [], []>} : vector<16x32xbf16>, vector<32x32xbf16>, vector<16x32xf32> -> vector<16x32xf32>
    %5 = arith.truncf %4 : vector<16x32xf32> to vector<16x32xbf16>
    %6 = vector.extract_strided_slice %5 {offsets = [0, 0], sizes = [16, 8], strides = [1, 1]} : vector<16x32xbf16> to vector<16x8xbf16>
    %c0_4 = arith.constant 0 : index
    %c0_5 = arith.constant 0 : index
    %c0_6 = arith.constant 0 : index
    %c0_7 = arith.constant 0 : index
    %7 = vector.load %arg3[%c0_4, %c0_5, %c0_6, %c0_7] : memref<1x4x8x32xbf16, #tpu.memory_space<vmem>>, vector<1x1x8x32xbf16>
    %8 = vector.shape_cast %7 : vector<1x1x8x32xbf16> to vector<8x32xbf16>
    %cst_8 = arith.constant dense<0.000000e+00> : vector<16x32xf32>
    %9 = tpu.matmul %6, %8, %cst_8 {dimension_numbers = #tpu.dot_dimension_numbers<[1], [0], [0], [1], [0, 0, 1, 1], [], []>} : vector<16x8xbf16>, vector<8x32xbf16>, vector<16x32xf32> -> vector<16x32xf32>
    %cst_9 = arith.constant dense<0xFF800000> : vector<16xf32>
    %10 = vector.multi_reduction <maximumf>, %9, %cst_9 [1] : vector<16x32xf32> to vector<16xf32>
    %11 = vector.shape_cast %10 : vector<16xf32> to vector<16x1xf32>
    %12 = vector.broadcast %11 : vector<16x1xf32> to vector<16x32xf32>
    %13 = arith.subf %9, %12 : vector<16x32xf32>
    %14 = math.exp %13 : vector<16x32xf32>
    %cst_10 = arith.constant dense<0.000000e+00> : vector<16xf32>
    %15 = vector.multi_reduction <add>, %14, %cst_10 [1] : vector<16x32xf32> to vector<16xf32>
    %16 = vector.shape_cast %15 : vector<16xf32> to vector<16x1xf32>
    %17 = arith.truncf %14 : vector<16x32xf32> to vector<16x32xbf16>
    %c0_11 = arith.constant 0 : index
    %c0_12 = arith.constant 0 : index
    %c0_13 = arith.constant 0 : index
    %c0_14 = arith.constant 0 : index
    %18 = vector.load %arg4[%c0_11, %c0_12, %c0_13, %c0_14] : memref<1x4x32x8xbf16, #tpu.memory_space<vmem>>, vector<1x1x32x8xbf16>
    %19 = vector.shape_cast %18 : vector<1x1x32x8xbf16> to vector<32x8xbf16>
    %cst_15 = arith.constant dense<0.000000e+00> : vector<16x8xf32>
    %20 = tpu.matmul %17, %19, %cst_15 {dimension_numbers = #tpu.dot_dimension_numbers<[1], [0], [0], [1], [0, 0, 1, 1], [], []>} : vector<16x32xbf16>, vector<32x8xbf16>, vector<16x8xf32> -> vector<16x8xf32>
    %21 = tpu.reciprocal %16 {approx = true} : vector<16x1xf32> -> vector<16x1xf32>
    %22 = vector.broadcast %21 : vector<16x1xf32> to vector<16x8xf32>
    %23 = arith.mulf %20, %22 : vector<16x8xf32>
    %24 = vector.extract_strided_slice %5 {offsets = [0, 8], sizes = [16, 8], strides = [1, 1]} : vector<16x32xbf16> to vector<16x8xbf16>
    %c0_16 = arith.constant 0 : index
    %c1 = arith.constant 1 : index
    %c0_17 = arith.constant 0 : index
    %c0_18 = arith.constant 0 : index
    %25 = vector.load %arg3[%c0_16, %c1, %c0_17, %c0_18] : memref<1x4x8x32xbf16, #tpu.memory_space<vmem>>, vector<1x1x8x32xbf16>
    %26 = vector.shape_cast %25 : vector<1x1x8x32xbf16> to vector<8x32xbf16>
    %cst_19 = arith.constant dense<0.000000e+00> : vector<16x32xf32>
    %27 = tpu.matmul %24, %26, %cst_19 {dimension_numbers = #tpu.dot_dimension_numbers<[1], [0], [0], [1], [0, 0, 1, 1], [], []>} : vector<16x8xbf16>, vector<8x32xbf16>, vector<16x32xf32> -> vector<16x32xf32>
    %cst_20 = arith.constant dense<0xFF800000> : vector<16xf32>
    %28 = vector.multi_reduction <maximumf>, %27, %cst_20 [1] : vector<16x32xf32> to vector<16xf32>
    %29 = vector.shape_cast %28 : vector<16xf32> to vector<16x1xf32>
    %30 = vector.broadcast %29 : vector<16x1xf32> to vector<16x32xf32>
    %31 = arith.subf %27, %30 : vector<16x32xf32>
    %32 = math.exp %31 : vector<16x32xf32>
    %cst_21 = arith.constant dense<0.000000e+00> : vector<16xf32>
    %33 = vector.multi_reduction <add>, %32, %cst_21 [1] : vector<16x32xf32> to vector<16xf32>
    %34 = vector.shape_cast %33 : vector<16xf32> to vector<16x1xf32>
    %35 = arith.truncf %32 : vector<16x32xf32> to vector<16x32xbf16>
    %c0_22 = arith.constant 0 : index
    %c1_23 = arith.constant 1 : index
    %c0_24 = arith.constant 0 : index
    %c0_25 = arith.constant 0 : index
    %36 = vector.load %arg4[%c0_22, %c1_23, %c0_24, %c0_25] : memref<1x4x32x8xbf16, #tpu.memory_space<vmem>>, vector<1x1x32x8xbf16>
    %37 = vector.shape_cast %36 : vector<1x1x32x8xbf16> to vector<32x8xbf16>
    %cst_26 = arith.constant dense<0.000000e+00> : vector<16x8xf32>
    %38 = tpu.matmul %35, %37, %cst_26 {dimension_numbers = #tpu.dot_dimension_numbers<[1], [0], [0], [1], [0, 0, 1, 1], [], []>} : vector<16x32xbf16>, vector<32x8xbf16>, vector<16x8xf32> -> vector<16x8xf32>
    %39 = tpu.reciprocal %34 {approx = true} : vector<16x1xf32> -> vector<16x1xf32>
    %40 = vector.broadcast %39 : vector<16x1xf32> to vector<16x8xf32>
    %41 = arith.mulf %38, %40 : vector<16x8xf32>
    %42 = vector.extract_strided_slice %5 {offsets = [0, 16], sizes = [16, 8], strides = [1, 1]} : vector<16x32xbf16> to vector<16x8xbf16>
    %c0_27 = arith.constant 0 : index
    %c2 = arith.constant 2 : index
    %c0_28 = arith.constant 0 : index
    %c0_29 = arith.constant 0 : index
    %43 = vector.load %arg3[%c0_27, %c2, %c0_28, %c0_29] : memref<1x4x8x32xbf16, #tpu.memory_space<vmem>>, vector<1x1x8x32xbf16>
    %44 = vector.shape_cast %43 : vector<1x1x8x32xbf16> to vector<8x32xbf16>
    %cst_30 = arith.constant dense<0.000000e+00> : vector<16x32xf32>
    %45 = tpu.matmul %42, %44, %cst_30 {dimension_numbers = #tpu.dot_dimension_numbers<[1], [0], [0], [1], [0, 0, 1, 1], [], []>} : vector<16x8xbf16>, vector<8x32xbf16>, vector<16x32xf32> -> vector<16x32xf32>
    %cst_31 = arith.constant dense<0xFF800000> : vector<16xf32>
    %46 = vector.multi_reduction <maximumf>, %45, %cst_31 [1] : vector<16x32xf32> to vector<16xf32>
    %47 = vector.shape_cast %46 : vector<16xf32> to vector<16x1xf32>
    %48 = vector.broadcast %47 : vector<16x1xf32> to vector<16x32xf32>
    %49 = arith.subf %45, %48 : vector<16x32xf32>
    %50 = math.exp %49 : vector<16x32xf32>
    %cst_32 = arith.constant dense<0.000000e+00> : vector<16xf32>
    %51 = vector.multi_reduction <add>, %50, %cst_32 [1] : vector<16x32xf32> to vector<16xf32>
    %52 = vector.shape_cast %51 : vector<16xf32> to vector<16x1xf32>
    %53 = arith.truncf %50 : vector<16x32xf32> to vector<16x32xbf16>
    %c0_33 = arith.constant 0 : index
    %c2_34 = arith.constant 2 : index
    %c0_35 = arith.constant 0 : index
    %c0_36 = arith.constant 0 : index
    %54 = vector.load %arg4[%c0_33, %c2_34, %c0_35, %c0_36] : memref<1x4x32x8xbf16, #tpu.memory_space<vmem>>, vector<1x1x32x8xbf16>
    %55 = vector.shape_cast %54 : vector<1x1x32x8xbf16> to vector<32x8xbf16>
    %cst_37 = arith.constant dense<0.000000e+00> : vector<16x8xf32>
    %56 = tpu.matmul %53, %55, %cst_37 {dimension_numbers = #tpu.dot_dimension_numbers<[1], [0], [0], [1], [0, 0, 1, 1], [], []>} : vector<16x32xbf16>, vector<32x8xbf16>, vector<16x8xf32> -> vector<16x8xf32>
    %57 = tpu.reciprocal %52 {approx = true} : vector<16x1xf32> -> vector<16x1xf32>
    %58 = vector.broadcast %57 : vector<16x1xf32> to vector<16x8xf32>
    %59 = arith.mulf %56, %58 : vector<16x8xf32>
    %60 = vector.extract_strided_slice %5 {offsets = [0, 24], sizes = [16, 8], strides = [1, 1]} : vector<16x32xbf16> to vector<16x8xbf16>
    %c0_38 = arith.constant 0 : index
    %c3 = arith.constant 3 : index
    %c0_39 = arith.constant 0 : index
    %c0_40 = arith.constant 0 : index
    %61 = vector.load %arg3[%c0_38, %c3, %c0_39, %c0_40] : memref<1x4x8x32xbf16, #tpu.memory_space<vmem>>, vector<1x1x8x32xbf16>
    %62 = vector.shape_cast %61 : vector<1x1x8x32xbf16> to vector<8x32xbf16>
    %cst_41 = arith.constant dense<0.000000e+00> : vector<16x32xf32>
    %63 = tpu.matmul %60, %62, %cst_41 {dimension_numbers = #tpu.dot_dimension_numbers<[1], [0], [0], [1], [0, 0, 1, 1], [], []>} : vector<16x8xbf16>, vector<8x32xbf16>, vector<16x32xf32> -> vector<16x32xf32>
    %cst_42 = arith.constant dense<0xFF800000> : vector<16xf32>
    %64 = vector.multi_reduction <maximumf>, %63, %cst_42 [1] : vector<16x32xf32> to vector<16xf32>
    %65 = vector.shape_cast %64 : vector<16xf32> to vector<16x1xf32>
    %66 = vector.broadcast %65 : vector<16x1xf32> to vector<16x32xf32>
    %67 = arith.subf %63, %66 : vector<16x32xf32>
    %68 = math.exp %67 : vector<16x32xf32>
    %cst_43 = arith.constant dense<0.000000e+00> : vector<16xf32>
    %69 = vector.multi_reduction <add>, %68, %cst_43 [1] : vector<16x32xf32> to vector<16xf32>
    %70 = vector.shape_cast %69 : vector<16xf32> to vector<16x1xf32>
    %71 = arith.truncf %68 : vector<16x32xf32> to vector<16x32xbf16>
    %c0_44 = arith.constant 0 : index
    %c3_45 = arith.constant 3 : index
    %c0_46 = arith.constant 0 : index
    %c0_47 = arith.constant 0 : index
    %72 = vector.load %arg4[%c0_44, %c3_45, %c0_46, %c0_47] : memref<1x4x32x8xbf16, #tpu.memory_space<vmem>>, vector<1x1x32x8xbf16>
    %73 = vector.shape_cast %72 : vector<1x1x32x8xbf16> to vector<32x8xbf16>
    %cst_48 = arith.constant dense<0.000000e+00> : vector<16x8xf32>
    %74 = tpu.matmul %71, %73, %cst_48 {dimension_numbers = #tpu.dot_dimension_numbers<[1], [0], [0], [1], [0, 0, 1, 1], [], []>} : vector<16x32xbf16>, vector<32x8xbf16>, vector<16x8xf32> -> vector<16x8xf32>
    %75 = tpu.reciprocal %70 {approx = true} : vector<16x1xf32> -> vector<16x1xf32>
    %76 = vector.broadcast %75 : vector<16x1xf32> to vector<16x8xf32>
    %77 = arith.mulf %74, %76 : vector<16x8xf32>
    %78 = tpu.concatenate %23, %41, %59, %77 in 1 : vector<16x8xf32>, vector<16x8xf32>, vector<16x8xf32>, vector<16x8xf32> -> vector<16x32xf32>
    %79 = arith.truncf %78 : vector<16x32xf32> to vector<16x32xbf16>
    %c0_49 = arith.constant 0 : index
    %c0_50 = arith.constant 0 : index
    %80 = vector.load %arg6[%c0_49, %c0_50] : memref<32x32xbf16, #tpu.memory_space<vmem>>, vector<32x32xbf16>
    %cst_51 = arith.constant dense<0.000000e+00> : vector<16x32xf32>
    %81 = tpu.matmul %79, %80, %cst_51 {dimension_numbers = #tpu.dot_dimension_numbers<[1], [0], [0], [1], [0, 0, 1, 1], [], []>} : vector<16x32xbf16>, vector<32x32xbf16>, vector<16x32xf32> -> vector<16x32xf32>
    %82 = arith.addf %1, %81 : vector<16x32xf32>
    %c0_52 = arith.constant 0 : index
    %c0_53 = arith.constant 0 : index
    %83 = vector.load %arg7[%c0_52, %c0_53] : memref<1x32xf32, #tpu.memory_space<vmem>>, vector<1x32xf32>
    %c0_54 = arith.constant 0 : index
    %c0_55 = arith.constant 0 : index
    %84 = vector.load %arg8[%c0_54, %c0_55] : memref<1x32xf32, #tpu.memory_space<vmem>>, vector<1x32xf32>
    %cst_56 = arith.constant dense<0.000000e+00> : vector<16xf32>
    %85 = vector.multi_reduction <add>, %82, %cst_56 [1] : vector<16x32xf32> to vector<16xf32>
    %86 = vector.shape_cast %85 : vector<16xf32> to vector<16x1xf32>
    %cst_57 = arith.constant 3.125000e-02 : f32
    %87 = vector.broadcast %cst_57 : f32 to vector<16x1xf32>
    %88 = arith.mulf %86, %87 : vector<16x1xf32>
    %89 = vector.broadcast %88 : vector<16x1xf32> to vector<16x32xf32>
    %90 = arith.subf %82, %89 : vector<16x32xf32>
    %91 = arith.mulf %90, %90 : vector<16x32xf32>
    %cst_58 = arith.constant dense<0.000000e+00> : vector<16xf32>
    %92 = vector.multi_reduction <add>, %91, %cst_58 [1] : vector<16x32xf32> to vector<16xf32>
    %93 = vector.shape_cast %92 : vector<16xf32> to vector<16x1xf32>
    %cst_59 = arith.constant 3.125000e-02 : f32
    %94 = vector.broadcast %cst_59 : f32 to vector<16x1xf32>
    %95 = arith.mulf %93, %94 : vector<16x1xf32>
    %cst_60 = arith.constant 9.99999974E-6 : f32
    %96 = vector.broadcast %cst_60 : f32 to vector<16x1xf32>
    %97 = arith.addf %95, %96 : vector<16x1xf32>
    %98 = math.rsqrt %97 : vector<16x1xf32>
    %99 = vector.broadcast %98 : vector<16x1xf32> to vector<16x32xf32>
    %100 = arith.mulf %90, %99 : vector<16x32xf32>
    %101 = vector.broadcast %83 : vector<1x32xf32> to vector<16x32xf32>
    %102 = arith.mulf %100, %101 : vector<16x32xf32>
    %103 = vector.broadcast %84 : vector<1x32xf32> to vector<16x32xf32>
    %104 = arith.addf %102, %103 : vector<16x32xf32>
    %105 = arith.truncf %104 : vector<16x32xf32> to vector<16x32xbf16>
    %cst_61 = arith.constant 0.000000e+00 : f32
    %106 = vector.broadcast %cst_61 : f32 to vector<16x32xf32>
    %c0_62 = arith.constant 0 : index
    %c0_63 = arith.constant 0 : index
    %107 = vector.load %arg9[%c0_62, %c0_63] : memref<32x64xbf16, #tpu.memory_space<vmem>>, vector<32x64xbf16>
    %cst_64 = arith.constant dense<0.000000e+00> : vector<16x64xf32>
    %108 = tpu.matmul %105, %107, %cst_64 {dimension_numbers = #tpu.dot_dimension_numbers<[1], [0], [0], [1], [0, 0, 1, 1], [], []>} : vector<16x32xbf16>, vector<32x64xbf16>, vector<16x64xf32> -> vector<16x64xf32>
    %c0_65 = arith.constant 0 : index
    %c0_66 = arith.constant 0 : index
    %109 = vector.load %arg10[%c0_65, %c0_66] : memref<1x64xf32, #tpu.memory_space<vmem>>, vector<1x64xf32>
    %110 = vector.broadcast %109 : vector<1x64xf32> to vector<16x64xf32>
    %111 = arith.addf %108, %110 : vector<16x64xf32>
    %cst_67 = arith.constant 0.000000e+00 : f32
    %112 = vector.broadcast %cst_67 : f32 to vector<16x64xf32>
    %113 = arith.maximumf %111, %112 : vector<16x64xf32>
    %114 = arith.truncf %113 : vector<16x64xf32> to vector<16x64xbf16>
    %c0_68 = arith.constant 0 : index
    %c0_69 = arith.constant 0 : index
    %115 = vector.load %arg11[%c0_68, %c0_69] : memref<64x32xbf16, #tpu.memory_space<vmem>>, vector<64x32xbf16>
    %cst_70 = arith.constant dense<0.000000e+00> : vector<16x32xf32>
    %116 = tpu.matmul %114, %115, %cst_70 {dimension_numbers = #tpu.dot_dimension_numbers<[1], [0], [0], [1], [0, 0, 1, 1], [], []>} : vector<16x64xbf16>, vector<64x32xbf16>, vector<16x32xf32> -> vector<16x32xf32>
    %117 = arith.addf %106, %116 : vector<16x32xf32>
    %c0_71 = arith.constant 0 : index
    %c0_72 = arith.constant 0 : index
    %118 = vector.load %arg12[%c0_71, %c0_72] : memref<1x32xf32, #tpu.memory_space<vmem>>, vector<1x32xf32>
    %119 = vector.broadcast %118 : vector<1x32xf32> to vector<16x32xf32>
    %120 = arith.addf %117, %119 : vector<16x32xf32>
    %121 = arith.addf %104, %120 : vector<16x32xf32>
    %c0_73 = arith.constant 0 : index
    %c0_74 = arith.constant 0 : index
    %122 = vector.load %arg13[%c0_73, %c0_74] : memref<1x32xf32, #tpu.memory_space<vmem>>, vector<1x32xf32>
    %c0_75 = arith.constant 0 : index
    %c0_76 = arith.constant 0 : index
    %123 = vector.load %arg14[%c0_75, %c0_76] : memref<1x32xf32, #tpu.memory_space<vmem>>, vector<1x32xf32>
    %cst_77 = arith.constant dense<0.000000e+00> : vector<16xf32>
    %124 = vector.multi_reduction <add>, %121, %cst_77 [1] : vector<16x32xf32> to vector<16xf32>
    %125 = vector.shape_cast %124 : vector<16xf32> to vector<16x1xf32>
    %cst_78 = arith.constant 3.125000e-02 : f32
    %126 = vector.broadcast %cst_78 : f32 to vector<16x1xf32>
    %127 = arith.mulf %125, %126 : vector<16x1xf32>
    %128 = vector.broadcast %127 : vector<16x1xf32> to vector<16x32xf32>
    %129 = arith.subf %121, %128 : vector<16x32xf32>
    %130 = arith.mulf %129, %129 : vector<16x32xf32>
    %cst_79 = arith.constant dense<0.000000e+00> : vector<16xf32>
    %131 = vector.multi_reduction <add>, %130, %cst_79 [1] : vector<16x32xf32> to vector<16xf32>
    %132 = vector.shape_cast %131 : vector<16xf32> to vector<16x1xf32>
    %cst_80 = arith.constant 3.125000e-02 : f32
    %133 = vector.broadcast %cst_80 : f32 to vector<16x1xf32>
    %134 = arith.mulf %132, %133 : vector<16x1xf32>
    %cst_81 = arith.constant 9.99999974E-6 : f32
    %135 = vector.broadcast %cst_81 : f32 to vector<16x1xf32>
    %136 = arith.addf %134, %135 : vector<16x1xf32>
    %137 = math.rsqrt %136 : vector<16x1xf32>
    %138 = vector.broadcast %137 : vector<16x1xf32> to vector<16x32xf32>
    %139 = arith.mulf %129, %138 : vector<16x32xf32>
    %140 = vector.broadcast %122 : vector<1x32xf32> to vector<16x32xf32>
    %141 = arith.mulf %139, %140 : vector<16x32xf32>
    %142 = vector.broadcast %123 : vector<1x32xf32> to vector<16x32xf32>
    %143 = arith.addf %141, %142 : vector<16x32xf32>
    %c0_82 = arith.constant 0 : index
    %c0_83 = arith.constant 0 : index
    %c0_84 = arith.constant 0 : index
    %144 = vector.load %arg15[%c0_82, %c0_83, %c0_84] : memref<1x16x32xf32, #tpu.memory_space<vmem>>, vector<1x16x32xf32>
    %145 = vector.shape_cast %144 : vector<1x16x32xf32> to vector<16x32xf32>
    %146 = vector.shape_cast %143 : vector<16x32xf32> to vector<1x16x32xf32>
    tpu.vector_store %arg15[%c0_82, %c0_83, %c0_84], %146 {strides = array<i32>} : memref<1x16x32xf32, #tpu.memory_space<vmem>>, vector<1x16x32xf32>,
    return
  }
  func.func @transform_0(%arg0: i32, %arg1: i32) -> (i32, i32, i32) {
    %c0_i32 = arith.constant 0 : i32
    %c0_i32_0 = arith.constant 0 : i32
    return %arg0, %arg1, %c0_i32 : i32, i32, i32
  }
  func.func @transform_1(%arg0: i32, %arg1: i32) -> (i32, i32, i32, i32) {
    %c0_i32 = arith.constant 0 : i32
    %c0_i32_0 = arith.constant 0 : i32
    %c0_i32_1 = arith.constant 0 : i32
    %c0_i32_2 = arith.constant 0 : i32
    return %arg0, %c0_i32, %c0_i32_0, %c0_i32_1 : i32, i32, i32, i32
  }
  func.func @transform_2(%arg0: i32, %arg1: i32) -> (i32, i32, i32, i32) {
    %c0_i32 = arith.constant 0 : i32
    %c0_i32_0 = arith.constant 0 : i32
    %c0_i32_1 = arith.constant 0 : i32
    %c0_i32_2 = arith.constant 0 : i32
    return %arg0, %c0_i32, %c0_i32_0, %c0_i32_1 : i32, i32, i32, i32
  }
  func.func @transform_3(%arg0: i32, %arg1: i32) -> (i32, i32) {
    %c0_i32 = arith.constant 0 : i32
    %c0_i32_0 = arith.constant 0 : i32
    %c0_i32_1 = arith.constant 0 : i32
    return %c0_i32, %c0_i32_0 : i32, i32
  }
  func.func @transform_4(%arg0: i32, %arg1: i32) -> (i32, i32) {
    %c0_i32 = arith.constant 0 : i32
    %c0_i32_0 = arith.constant 0 : i32
    %c0_i32_1 = arith.constant 0 : i32
    return %c0_i32, %c0_i32_0 : i32, i32
  }
  func.func @transform_5(%arg0: i32, %arg1: i32) -> (i32, i32) {
    %c0_i32 = arith.constant 0 : i32
    %c0_i32_0 = arith.constant 0 : i32
    %c0_i32_1 = arith.constant 0 : i32
    return %c0_i32, %c0_i32_0 : i32, i32
  }
  func.func @transform_6(%arg0: i32, %arg1: i32) -> (i32, i32) {
    %c0_i32 = arith.constant 0 : i32
    %c0_i32_0 = arith.constant 0 : i32
    %c0_i32_1 = arith.constant 0 : i32
    return %c0_i32, %c0_i32_0 : i32, i32
  }
  func.func @transform_7(%arg0: i32, %arg1: i32) -> (i32, i32) {
    %c0_i32 = arith.constant 0 : i32
    %c0_i32_0 = arith.constant 0 : i32
    %c0_i32_1 = arith.constant 0 : i32
    return %c0_i32, %c0_i32_0 : i32, i32
  }
  func.func @transform_8(%arg0: i32, %arg1: i32) -> (i32, i32) {
    %c0_i32 = arith.constant 0 : i32
    %c0_i32_0 = arith.constant 0 : i32
    %c0_i32_1 = arith.constant 0 : i32
    return %c0_i32, %c0_i32_0 : i32, i32
  }
  func.func @transform_9(%arg0: i32, %arg1: i32) -> (i32, i32) {
    %c0_i32 = arith.constant 0 : i32
    %c0_i32_0 = arith.constant 0 : i32
    %c0_i32_1 = arith.constant 0 : i32
    return %c0_i32, %c0_i32_0 : i32, i32
  }
  func.func @transform_10(%arg0: i32, %arg1: i32) -> (i32, i32) {
    %c0_i32 = arith.constant 0 : i32
    %c0_i32_0 = arith.constant 0 : i32
    %c0_i32_1 = arith.constant 0 : i32
    return %c0_i32, %c0_i32_0 : i32, i32
  }
  func.func @transform_11(%arg0: i32, %arg1: i32) -> (i32, i32) {
    %c0_i32 = arith.constant 0 : i32
    %c0_i32_0 = arith.constant 0 : i32
    %c0_i32_1 = arith.constant 0 : i32
    return %c0_i32, %c0_i32_0 : i32, i32
  }
  func.func @transform_12(%arg0: i32, %arg1: i32) -> (i32, i32) {
    %c0_i32 = arith.constant 0 : i32
    %c0_i32_0 = arith.constant 0 : i32
    %c0_i32_1 = arith.constant 0 : i32
    return %c0_i32, %c0_i32_0 : i32, i32
  }
  func.func @transform_13(%arg0: i32, %arg1: i32) -> (i32, i32, i32) {
    %c0_i32 = arith.constant 0 : i32
    %c0_i32_0 = arith.constant 0 : i32
    return %arg0, %arg1, %c0_i32 : i32, i32, i32
  }
}

module attributes {stable_mosaic.version = 11 : i64} {
  func.func @transformer_layer_kernel(%arg0: i32, %arg1: i32, %arg2: memref<1x16x32xf32, #tpu.memory_space<vmem>>, %arg3: memref<1x4x8x32xbf16, #tpu.memory_space<vmem>>, %arg4: memref<1x4x32x8xbf16, #tpu.memory_space<vmem>>, %arg5: memref<32x32xbf16, #tpu.memory_space<vmem>>, %arg6: memref<32x32xbf16, #tpu.memory_space<vmem>>, %arg7: memref<1x32xf32, #tpu.memory_space<vmem>>, %arg8: memref<1x32xf32, #tpu.memory_space<vmem>>, %arg9: memref<32x64xbf16, #tpu.memory_space<vmem>>, %arg10: memref<1x64xf32, #tpu.memory_space<vmem>>, %arg11: memref<64x32xbf16, #tpu.memory_space<vmem>>, %arg12: memref<1x32xf32, #tpu.memory_space<vmem>>, %arg13: memref<1x32xf32, #tpu.memory_space<vmem>>, %arg14: memref<1x32xf32, #tpu.memory_space<vmem>>, %arg15: memref<1x16x32xf32, #tpu.memory_space<vmem>>) attributes {dimension_semantics = [#tpu.dimension_semantics<parallel>, #tpu.dimension_semantics<parallel>], iteration_bounds = array<i64: 2, 2>, scalar_prefetch = 0 : i64, scratch_operands = 0 : i64, tpu.core_type = #tpu.core_type<tc>, window_params = [{transform_indices = @transform_0, window_bounds = array<i64: 1, 16, 32>}, {transform_indices = @transform_1, window_bounds = array<i64: 1, 4, 8, 32>}, {transform_indices = @transform_2, window_bounds = array<i64: 1, 4, 32, 8>}, {pipeline_mode = #tpu.pipeline_mode<synchronous>, transform_indices = @transform_3, window_bounds = array<i64: 32, 32>}, {pipeline_mode = #tpu.pipeline_mode<synchronous>, transform_indices = @transform_4, window_bounds = array<i64: 32, 32>}, {pipeline_mode = #tpu.pipeline_mode<synchronous>, transform_indices = @transform_5, window_bounds = array<i64: 1, 32>}, {pipeline_mode = #tpu.pipeline_mode<synchronous>, transform_indices = @transform_6, window_bounds = array<i64: 1, 32>}, {pipeline_mode = #tpu.pipeline_mode<synchronous>, transform_indices = @transform_7, window_bounds = array<i64: 32, 64>}, {pipeline_mode = #tpu.pipeline_mode<synchronous>, transform_indices = @transform_8, window_bounds = array<i64: 1, 64>}, {pipeline_mode = #tpu.pipeline_mode<synchronous>, transform_indices = @transform_9, window_bounds = array<i64: 64, 32>}, {pipeline_mode = #tpu.pipeline_mode<synchronous>, transform_indices = @transform_10, window_bounds = array<i64: 1, 32>}, {pipeline_mode = #tpu.pipeline_mode<synchronous>, transform_indices = @transform_11, window_bounds = array<i64: 1, 32>}, {pipeline_mode = #tpu.pipeline_mode<synchronous>, transform_indices = @transform_12, window_bounds = array<i64: 1, 32>}, {transform_indices = @transform_13, window_bounds = array<i64: 1, 16, 32>}]} {
    %c0 = arith.constant 0 : index
    %c0_0 = arith.constant 0 : index
    %c0_1 = arith.constant 0 : index
    %0 = vector.load %arg2[%c0, %c0_0, %c0_1] : memref<1x16x32xf32, #tpu.memory_space<vmem>>, vector<1x16x32xf32>
    %1 = vector.shape_cast %0 : vector<1x16x32xf32> to vector<16x32xf32>
    %2 = arith.truncf %1 : vector<16x32xf32> to vector<16x32xbf16>
    %c0_2 = arith.constant 0 : index
    %c0_3 = arith.constant 0 : index
    %3 = vector.load %arg5[%c0_2, %c0_3] : memref<32x32xbf16, #tpu.memory_space<vmem>>, vector<32x32xbf16>
    %cst = arith.constant dense<0.000000e+00> : vector<16x32xf32>
    %4 = tpu.matmul %2, %3, %cst {dimension_numbers = #tpu.dot_dimension_numbers<[1], [0], [0], [1], [0, 0, 1, 1], [], []>} : vector<16x32xbf16>, vector<32x32xbf16>, vector<16x32xf32> -> vector<16x32xf32>
    %5 = arith.truncf %4 : vector<16x32xf32> to vector<16x32xbf16>
    %6 = vector.extract_strided_slice %5 {offsets = [0, 0], sizes = [16, 8], strides = [1, 1]} : vector<16x32xbf16> to vector<16x8xbf16>
    %c0_4 = arith.constant 0 : index
    %c0_5 = arith.constant 0 : index
    %c0_6 = arith.constant 0 : index
    %c0_7 = arith.constant 0 : index
    %7 = vector.load %arg3[%c0_4, %c0_5, %c0_6, %c0_7] : memref<1x4x8x32xbf16, #tpu.memory_space<vmem>>, vector<1x1x8x32xbf16>
    %8 = vector.shape_cast %7 : vector<1x1x8x32xbf16> to vector<8x32xbf16>
    %cst_8 = arith.constant dense<0.000000e+00> : vector<16x32xf32>
    %9 = tpu.matmul %6, %8, %cst_8 {dimension_numbers = #tpu.dot_dimension_numbers<[1], [0], [0], [1], [0, 0, 1, 1], [], []>} : vector<16x8xbf16>, vector<8x32xbf16>, vector<16x32xf32> -> vector<16x32xf32>
    %cst_9 = arith.constant dense<0xFF800000> : vector<16xf32>
    %10 = vector.multi_reduction <maximumf>, %9, %cst_9 [1] : vector<16x32xf32> to vector<16xf32>
    %11 = vector.shape_cast %10 : vector<16xf32> to vector<16x1xf32>
    %12 = vector.broadcast %11 : vector<16x1xf32> to vector<16x32xf32>
    %13 = arith.subf %9, %12 : vector<16x32xf32>
    %14 = math.exp %13 : vector<16x32xf32>
    %cst_10 = arith.constant dense<0.000000e+00> : vector<16xf32>
    %15 = vector.multi_reduction <add>, %14, %cst_10 [1] : vector<16x32xf32> to vector<16xf32>
    %16 = vector.shape_cast %15 : vector<16xf32> to vector<16x1xf32>
    %17 = arith.truncf %14 : vector<16x32xf32> to vector<16x32xbf16>
    %c0_11 = arith.constant 0 : index
    %c0_12 = arith.constant 0 : index
    %c0_13 = arith.constant 0 : index
    %c0_14 = arith.constant 0 : index
    %18 = vector.load %arg4[%c0_11, %c0_12, %c0_13, %c0_14] : memref<1x4x32x8xbf16, #tpu.memory_space<vmem>>, vector<1x1x32x8xbf16>
    %19 = vector.shape_cast %18 : vector<1x1x32x8xbf16> to vector<32x8xbf16>
    %cst_15 = arith.constant dense<0.000000e+00> : vector<16x8xf32>
    %20 = tpu.matmul %17, %19, %cst_15 {dimension_numbers = #tpu.dot_dimension_numbers<[1], [0], [0], [1], [0, 0, 1, 1], [], []>} : vector<16x32xbf16>, vector<32x8xbf16>, vector<16x8xf32> -> vector<16x8xf32>
    %21 = tpu.reciprocal %16 {approx = true} : vector<16x1xf32> -> vector<16x1xf32>
    %22 = vector.broadcast %21 : vector<16x1xf32> to vector<16x8xf32>
    %23 = arith.mulf %20, %22 : vector<16x8xf32>
    %24 = vector.extract_strided_slice %5 {offsets = [0, 8], sizes = [16, 8], strides = [1, 1]} : vector<16x32xbf16> to vector<16x8xbf16>
    %c0_16 = arith.constant 0 : index
    %c1 = arith.constant 1 : index
    %c0_17 = arith.constant 0 : index
    %c0_18 = arith.constant 0 : index
    %25 = vector.load %arg3[%c0_16, %c1, %c0_17, %c0_18] : memref<1x4x8x32xbf16, #tpu.memory_space<vmem>>, vector<1x1x8x32xbf16>
    %26 = vector.shape_cast %25 : vector<1x1x8x32xbf16> to vector<8x32xbf16>
    %cst_19 = arith.constant dense<0.000000e+00> : vector<16x32xf32>
    %27 = tpu.matmul %24, %26, %cst_19 {dimension_numbers = #tpu.dot_dimension_numbers<[1], [0], [0], [1], [0, 0, 1, 1], [], []>} : vector<16x8xbf16>, vector<8x32xbf16>, vector<16x32xf32> -> vector<16x32xf32>
    %cst_20 = arith.constant dense<0xFF800000> : vector<16xf32>
    %28 = vector.multi_reduction <maximumf>, %27, %cst_20 [1] : vector<16x32xf32> to vector<16xf32>
    %29 = vector.shape_cast %28 : vector<16xf32> to vector<16x1xf32>
    %30 = vector.broadcast %29 : vector<16x1xf32> to vector<16x32xf32>
    %31 = arith.subf %27, %30 : vector<16x32xf32>
    %32 = math.exp %31 : vector<16x32xf32>
    %cst_21 = arith.constant dense<0.000000e+00> : vector<16xf32>
    %33 = vector.multi_reduction <add>, %32, %cst_21 [1] : vector<16x32xf32> to vector<16xf32>
    %34 = vector.shape_cast %33 : vector<16xf32> to vector<16x1xf32>
    %35 = arith.truncf %32 : vector<16x32xf32> to vector<16x32xbf16>
    %c0_22 = arith.constant 0 : index
    %c1_23 = arith.constant 1 : index
    %c0_24 = arith.constant 0 : index
    %c0_25 = arith.constant 0 : index
    %36 = vector.load %arg4[%c0_22, %c1_23, %c0_24, %c0_25] : memref<1x4x32x8xbf16, #tpu.memory_space<vmem>>, vector<1x1x32x8xbf16>
    %37 = vector.shape_cast %36 : vector<1x1x32x8xbf16> to vector<32x8xbf16>
    %cst_26 = arith.constant dense<0.000000e+00> : vector<16x8xf32>
    %38 = tpu.matmul %35, %37, %cst_26 {dimension_numbers = #tpu.dot_dimension_numbers<[1], [0], [0], [1], [0, 0, 1, 1], [], []>} : vector<16x32xbf16>, vector<32x8xbf16>, vector<16x8xf32> -> vector<16x8xf32>
    %39 = tpu.reciprocal %34 {approx = true} : vector<16x1xf32> -> vector<16x1xf32>
    %40 = vector.broadcast %39 : vector<16x1xf32> to vector<16x8xf32>
    %41 = arith.mulf %38, %40 : vector<16x8xf32>
    %42 = vector.extract_strided_slice %5 {offsets = [0, 16], sizes = [16, 8], strides = [1, 1]} : vector<16x32xbf16> to vector<16x8xbf16>
    %c0_27 = arith.constant 0 : index
    %c2 = arith.constant 2 : index
    %c0_28 = arith.constant 0 : index
    %c0_29 = arith.constant 0 : index
    %43 = vector.load %arg3[%c0_27, %c2, %c0_28, %c0_29] : memref<1x4x8x32xbf16, #tpu.memory_space<vmem>>, vector<1x1x8x32xbf16>
    %44 = vector.shape_cast %43 : vector<1x1x8x32xbf16> to vector<8x32xbf16>
    %cst_30 = arith.constant dense<0.000000e+00> : vector<16x32xf32>
    %45 = tpu.matmul %42, %44, %cst_30 {dimension_numbers = #tpu.dot_dimension_numbers<[1], [0], [0], [1], [0, 0, 1, 1], [], []>} : vector<16x8xbf16>, vector<8x32xbf16>, vector<16x32xf32> -> vector<16x32xf32>
    %cst_31 = arith.constant dense<0xFF800000> : vector<16xf32>
    %46 = vector.multi_reduction <maximumf>, %45, %cst_31 [1] : vector<16x32xf32> to vector<16xf32>
    %47 = vector.shape_cast %46 : vector<16xf32> to vector<16x1xf32>
    %48 = vector.broadcast %47 : vector<16x1xf32> to vector<16x32xf32>
    %49 = arith.subf %45, %48 : vector<16x32xf32>
    %50 = math.exp %49 : vector<16x32xf32>
    %cst_32 = arith.constant dense<0.000000e+00> : vector<16xf32>
    %51 = vector.multi_reduction <add>, %50, %cst_32 [1] : vector<16x32xf32> to vector<16xf32>
    %52 = vector.shape_cast %51 : vector<16xf32> to vector<16x1xf32>
    %53 = arith.truncf %50 : vector<16x32xf32> to vector<16x32xbf16>
    %c0_33 = arith.constant 0 : index
    %c2_34 = arith.constant 2 : index
    %c0_35 = arith.constant 0 : index
    %c0_36 = arith.constant 0 : index
    %54 = vector.load %arg4[%c0_33, %c2_34, %c0_35, %c0_36] : memref<1x4x32x8xbf16, #tpu.memory_space<vmem>>, vector<1x1x32x8xbf16>
    %55 = vector.shape_cast %54 : vector<1x1x32x8xbf16> to vector<32x8xbf16>
    %cst_37 = arith.constant dense<0.000000e+00> : vector<16x8xf32>
    %56 = tpu.matmul %53, %55, %cst_37 {dimension_numbers = #tpu.dot_dimension_numbers<[1], [0], [0], [1], [0, 0, 1, 1], [], []>} : vector<16x32xbf16>, vector<32x8xbf16>, vector<16x8xf32> -> vector<16x8xf32>
    %57 = tpu.reciprocal %52 {approx = true} : vector<16x1xf32> -> vector<16x1xf32>
    %58 = vector.broadcast %57 : vector<16x1xf32> to vector<16x8xf32>
    %59 = arith.mulf %56, %58 : vector<16x8xf32>
    %60 = vector.extract_strided_slice %5 {offsets = [0, 24], sizes = [16, 8], strides = [1, 1]} : vector<16x32xbf16> to vector<16x8xbf16>
    %c0_38 = arith.constant 0 : index
    %c3 = arith.constant 3 : index
    %c0_39 = arith.constant 0 : index
    %c0_40 = arith.constant 0 : index
    %61 = vector.load %arg3[%c0_38, %c3, %c0_39, %c0_40] : memref<1x4x8x32xbf16, #tpu.memory_space<vmem>>, vector<1x1x8x32xbf16>
    %62 = vector.shape_cast %61 : vector<1x1x8x32xbf16> to vector<8x32xbf16>
    %cst_41 = arith.constant dense<0.000000e+00> : vector<16x32xf32>
    %63 = tpu.matmul %60, %62, %cst_41 {dimension_numbers = #tpu.dot_dimension_numbers<[1], [0], [0], [1], [0, 0, 1, 1], [], []>} : vector<16x8xbf16>, vector<8x32xbf16>, vector<16x32xf32> -> vector<16x32xf32>
    %cst_42 = arith.constant dense<0xFF800000> : vector<16xf32>
    %64 = vector.multi_reduction <maximumf>, %63, %cst_42 [1] : vector<16x32xf32> to vector<16xf32>
    %65 = vector.shape_cast %64 : vector<16xf32> to vector<16x1xf32>
    %66 = vector.broadcast %65 : vector<16x1xf32> to vector<16x32xf32>
    %67 = arith.subf %63, %66 : vector<16x32xf32>
    %68 = math.exp %67 : vector<16x32xf32>
    %cst_43 = arith.constant dense<0.000000e+00> : vector<16xf32>
    %69 = vector.multi_reduction <add>, %68, %cst_43 [1] : vector<16x32xf32> to vector<16xf32>
    %70 = vector.shape_cast %69 : vector<16xf32> to vector<16x1xf32>
    %71 = arith.truncf %68 : vector<16x32xf32> to vector<16x32xbf16>
    %c0_44 = arith.constant 0 : index
    %c3_45 = arith.constant 3 : index
    %c0_46 = arith.constant 0 : index
    %c0_47 = arith.constant 0 : index
    %72 = vector.load %arg4[%c0_44, %c3_45, %c0_46, %c0_47] : memref<1x4x32x8xbf16, #tpu.memory_space<vmem>>, vector<1x1x32x8xbf16>
    %73 = vector.shape_cast %72 : vector<1x1x32x8xbf16> to vector<32x8xbf16>
    %cst_48 = arith.constant dense<0.000000e+00> : vector<16x8xf32>
    %74 = tpu.matmul %71, %73, %cst_48 {dimension_numbers = #tpu.dot_dimension_numbers<[1], [0], [0], [1], [0, 0, 1, 1], [], []>} : vector<16x32xbf16>, vector<32x8xbf16>, vector<16x8xf32> -> vector<16x8xf32>
    %75 = tpu.reciprocal %70 {approx = true} : vector<16x1xf32> -> vector<16x1xf32>
    %76 = vector.broadcast %75 : vector<16x1xf32> to vector<16x8xf32>
    %77 = arith.mulf %74, %76 : vector<16x8xf32>
    %78 = tpu.concatenate %23, %41, %59, %77 in 1 : vector<16x8xf32>, vector<16x8xf32>, vector<16x8xf32>, vector<16x8xf32> -> vector<16x32xf32>
    %79 = arith.truncf %78 : vector<16x32xf32> to vector<16x32xbf16>
    %c0_49 = arith.constant 0 : index
    %c0_50 = arith.constant 0 : index
    %80 = vector.load %arg6[%c0_49, %c0_50] : memref<32x32xbf16, #tpu.memory_space<vmem>>, vector<32x32xbf16>
    %cst_51 = arith.constant dense<0.000000e+00> : vector<16x32xf32>
    %81 = tpu.matmul %79, %80, %cst_51 {dimension_numbers = #tpu.dot_dimension_numbers<[1], [0], [0], [1], [0, 0, 1, 1], [], []>} : vector<16x32xbf16>, vector<32x32xbf16>, vector<16x32xf32> -> vector<16x32xf32>
    %82 = arith.addf %1, %81 : vector<16x32xf32>
    %c0_52 = arith.constant 0 : index
    %c0_53 = arith.constant 0 : index
    %83 = vector.load %arg7[%c0_52, %c0_53] : memref<1x32xf32, #tpu.memory_space<vmem>>, vector<1x32xf32>
    %c0_54 = arith.constant 0 : index
    %c0_55 = arith.constant 0 : index
    %84 = vector.load %arg8[%c0_54, %c0_55] : memref<1x32xf32, #tpu.memory_space<vmem>>, vector<1x32xf32>
    %cst_56 = arith.constant dense<0.000000e+00> : vector<16xf32>
    %85 = vector.multi_reduction <add>, %82, %cst_56 [1] : vector<16x32xf32> to vector<16xf32>
    %86 = vector.shape_cast %85 : vector<16xf32> to vector<16x1xf32>
    %cst_57 = arith.constant 3.125000e-02 : f32
    %87 = vector.broadcast %cst_57 : f32 to vector<16x1xf32>
    %88 = arith.mulf %86, %87 : vector<16x1xf32>
    %89 = vector.broadcast %88 : vector<16x1xf32> to vector<16x32xf32>
    %90 = arith.subf %82, %89 : vector<16x32xf32>
    %91 = arith.mulf %90, %90 : vector<16x32xf32>
    %cst_58 = arith.constant dense<0.000000e+00> : vector<16xf32>
    %92 = vector.multi_reduction <add>, %91, %cst_58 [1] : vector<16x32xf32> to vector<16xf32>
    %93 = vector.shape_cast %92 : vector<16xf32> to vector<16x1xf32>
    %cst_59 = arith.constant 3.125000e-02 : f32
    %94 = vector.broadcast %cst_59 : f32 to vector<16x1xf32>
    %95 = arith.mulf %93, %94 : vector<16x1xf32>
    %cst_60 = arith.constant 9.99999974E-6 : f32
    %96 = vector.broadcast %cst_60 : f32 to vector<16x1xf32>
    %97 = arith.addf %95, %96 : vector<16x1xf32>
    %98 = math.rsqrt %97 : vector<16x1xf32>
    %99 = vector.broadcast %98 : vector<16x1xf32> to vector<16x32xf32>
    %100 = arith.mulf %90, %99 : vector<16x32xf32>
    %101 = vector.broadcast %83 : vector<1x32xf32> to vector<16x32xf32>
    %102 = arith.mulf %100, %101 : vector<16x32xf32>
    %103 = vector.broadcast %84 : vector<1x32xf32> to vector<16x32xf32>
    %104 = arith.addf %102, %103 : vector<16x32xf32>
    %105 = arith.truncf %104 : vector<16x32xf32> to vector<16x32xbf16>
    %cst_61 = arith.constant 0.000000e+00 : f32
    %106 = vector.broadcast %cst_61 : f32 to vector<16x32xf32>
    %c0_62 = arith.constant 0 : index
    %c0_63 = arith.constant 0 : index
    %107 = vector.load %arg9[%c0_62, %c0_63] : memref<32x64xbf16, #tpu.memory_space<vmem>>, vector<32x64xbf16>
    %cst_64 = arith.constant dense<0.000000e+00> : vector<16x64xf32>
    %108 = tpu.matmul %105, %107, %cst_64 {dimension_numbers = #tpu.dot_dimension_numbers<[1], [0], [0], [1], [0, 0, 1, 1], [], []>} : vector<16x32xbf16>, vector<32x64xbf16>, vector<16x64xf32> -> vector<16x64xf32>
    %c0_65 = arith.constant 0 : index
    %c0_66 = arith.constant 0 : index
    %109 = vector.load %arg10[%c0_65, %c0_66] : memref<1x64xf32, #tpu.memory_space<vmem>>, vector<1x64xf32>
    %110 = vector.broadcast %109 : vector<1x64xf32> to vector<16x64xf32>
    %111 = arith.addf %108, %110 : vector<16x64xf32>
    %cst_67 = arith.constant 0.000000e+00 : f32
    %112 = vector.broadcast %cst_67 : f32 to vector<16x64xf32>
    %113 = arith.maximumf %111, %112 : vector<16x64xf32>
    %114 = arith.truncf %113 : vector<16x64xf32> to vector<16x64xbf16>
    %c0_68 = arith.constant 0 : index
    %c0_69 = arith.constant 0 : index
    %115 = vector.load %arg11[%c0_68, %c0_69] : memref<64x32xbf16, #tpu.memory_space<vmem>>, vector<64x32xbf16>
    %cst_70 = arith.constant dense<0.000000e+00> : vector<16x32xf32>
    %116 = tpu.matmul %114, %115, %cst_70 {dimension_numbers = #tpu.dot_dimension_numbers<[1], [0], [0], [1], [0, 0, 1, 1], [], []>} : vector<16x64xbf16>, vector<64x32xbf16>, vector<16x32xf32> -> vector<16x32xf32>
    %117 = arith.addf %106, %116 : vector<16x32xf32>
    %c0_71 = arith.constant 0 : index
    %c0_72 = arith.constant 0 : index
    %118 = vector.load %arg12[%c0_71, %c0_72] : memref<1x32xf32, #tpu.memory_space<vmem>>, vector<1x32xf32>
    %119 = vector.broadcast %118 : vector<1x32xf32> to vector<16x32xf32>
    %120 = arith.addf %117, %119 : vector<16x32xf32>
    %121 = arith.addf %104, %120 : vector<16x32xf32>
    %c0_73 = arith.constant 0 : index
    %c0_74 = arith.constant 0 : index
    %122 = vector.load %arg13[%c0_73, %c0_74] : memref<1x32xf32, #tpu.memory_space<vmem>>, vector<1x32xf32>
    %c0_75 = arith.constant 0 : index
    %c0_76 = arith.constant 0 : index
    %123 = vector.load %arg14[%c0_75, %c0_76] : memref<1x32xf32, #tpu.memory_space<vmem>>, vector<1x32xf32>
    %cst_77 = arith.constant dense<0.000000e+00> : vector<16xf32>
    %124 = vector.multi_reduction <add>, %121, %cst_77 [1] : vector<16x32xf32> to vector<16xf32>
    %125 = vector.shape_cast %124 : vector<16xf32> to vector<16x1xf32>
    %cst_78 = arith.constant 3.125000e-02 : f32
    %126 = vector.broadcast %cst_78 : f32 to vector<16x1xf32>
    %127 = arith.mulf %125, %126 : vector<16x1xf32>
    %128 = vector.broadcast %127 : vector<16x1xf32> to vector<16x32xf32>
    %129 = arith.subf %121, %128 : vector<16x32xf32>
    %130 = arith.mulf %129, %129 : vector<16x32xf32>
    %cst_79 = arith.constant dense<0.000000e+00> : vector<16xf32>
    %131 = vector.multi_reduction <add>, %130, %cst_79 [1] : vector<16x32xf32> to vector<16xf32>
    %132 = vector.shape_cast %131 : vector<16xf32> to vector<16x1xf32>
    %cst_80 = arith.constant 3.125000e-02 : f32
    %133 = vector.broadcast %cst_80 : f32 to vector<16x1xf32>
    %134 = arith.mulf %132, %133 : vector<16x1xf32>
    %cst_81 = arith.constant 9.99999974E-6 : f32
    %135 = vector.broadcast %cst_81 : f32 to vector<16x1xf32>
    %136 = arith.addf %134, %135 : vector<16x1xf32>
    %137 = math.rsqrt %136 : vector<16x1xf32>
    %138 = vector.broadcast %137 : vector<16x1xf32> to vector<16x32xf32>
    %139 = arith.mulf %129, %138 : vector<16x32xf32>
    %140 = vector.broadcast %122 : vector<1x32xf32> to vector<16x32xf32>
    %141 = arith.mulf %139, %140 : vector<16x32xf32>
    %142 = vector.broadcast %123 : vector<1x32xf32> to vector<16x32xf32>
    %143 = arith.addf %141, %142 : vector<16x32xf32>
    %c0_82 = arith.constant 0 : index
    %c0_83 = arith.constant 0 : index
    %c0_84 = arith.constant 0 : index
    %144 = vector.load %arg15[%c0_82, %c0_83, %c0_84] : memref<1x16x32xf32, #tpu.memory_space<vmem>>, vector<1x16x32xf32>
    %145 = vector.shape_cast %144 : vector<1x16x32xf32> to vector<16x32xf32>
    %146 = vector.shape_cast %143 : vector<16x32xf32> to vector<1x16x32xf32>
    tpu.vector_store %arg15[%c0_82, %c0_83, %c0_84], %146 {strides = array<i32>} : memref<1x16x32xf32, #tpu.memory_space<vmem>>, vector<1x16x32xf32>,
    return
  }
  func.func @transform_0(%arg0: i32, %arg1: i32) -> (i32, i32, i32) {
    %c0_i32 = arith.constant 0 : i32
    %c0_i32_0 = arith.constant 0 : i32
    return %arg0, %arg1, %c0_i32 : i32, i32, i32
  }
  func.func @transform_1(%arg0: i32, %arg1: i32) -> (i32, i32, i32, i32) {
    %c0_i32 = arith.constant 0 : i32
    %c0_i32_0 = arith.constant 0 : i32
    %c0_i32_1 = arith.constant 0 : i32
    %c0_i32_2 = arith.constant 0 : i32
    return %arg0, %c0_i32, %c0_i32_0, %c0_i32_1 : i32, i32, i32, i32
  }
  func.func @transform_2(%arg0: i32, %arg1: i32) -> (i32, i32, i32, i32) {
    %c0_i32 = arith.constant 0 : i32
    %c0_i32_0 = arith.constant 0 : i32
    %c0_i32_1 = arith.constant 0 : i32
    %c0_i32_2 = arith.constant 0 : i32
    return %arg0, %c0_i32, %c0_i32_0, %c0_i32_1 : i32, i32, i32, i32
  }
  func.func @transform_3(%arg0: i32, %arg1: i32) -> (i32, i32) {
    %c0_i32 = arith.constant 0 : i32
    %c0_i32_0 = arith.constant 0 : i32
    %c0_i32_1 = arith.constant 0 : i32
    return %c0_i32, %c0_i32_0 : i32, i32
  }
  func.func @transform_4(%arg0: i32, %arg1: i32) -> (i32, i32) {
    %c0_i32 = arith.constant 0 : i32
    %c0_i32_0 = arith.constant 0 : i32
    %c0_i32_1 = arith.constant 0 : i32
    return %c0_i32, %c0_i32_0 : i32, i32
  }
  func.func @transform_5(%arg0: i32, %arg1: i32) -> (i32, i32) {
    %c0_i32 = arith.constant 0 : i32
    %c0_i32_0 = arith.constant 0 : i32
    %c0_i32_1 = arith.constant 0 : i32
    return %c0_i32, %c0_i32_0 : i32, i32
  }
  func.func @transform_6(%arg0: i32, %arg1: i32) -> (i32, i32) {
    %c0_i32 = arith.constant 0 : i32
    %c0_i32_0 = arith.constant 0 : i32
    %c0_i32_1 = arith.constant 0 : i32
    return %c0_i32, %c0_i32_0 : i32, i32
  }
  func.func @transform_7(%arg0: i32, %arg1: i32) -> (i32, i32) {
    %c0_i32 = arith.constant 0 : i32
    %c0_i32_0 = arith.constant 0 : i32
    %c0_i32_1 = arith.constant 0 : i32
    return %c0_i32, %c0_i32_0 : i32, i32
  }
  func.func @transform_8(%arg0: i32, %arg1: i32) -> (i32, i32) {
    %c0_i32 = arith.constant 0 : i32
    %c0_i32_0 = arith.constant 0 : i32
    %c0_i32_1 = arith.constant 0 : i32
    return %c0_i32, %c0_i32_0 : i32, i32
  }
  func.func @transform_9(%arg0: i32, %arg1: i32) -> (i32, i32) {
    %c0_i32 = arith.constant 0 : i32
    %c0_i32_0 = arith.constant 0 : i32
    %c0_i32_1 = arith.constant 0 : i32
    return %c0_i32, %c0_i32_0 : i32, i32
  }
  func.func @transform_10(%arg0: i32, %arg1: i32) -> (i32, i32) {
    %c0_i32 = arith.constant 0 : i32
    %c0_i32_0 = arith.constant 0 : i32
    %c0_i32_1 = arith.constant 0 : i32
    return %c0_i32, %c0_i32_0 : i32, i32
  }
  func.func @transform_11(%arg0: i32, %arg1: i32) -> (i32, i32) {
    %c0_i32 = arith.constant 0 : i32
    %c0_i32_0 = arith.constant 0 : i32
    %c0_i32_1 = arith.constant 0 : i32
    return %c0_i32, %c0_i32_0 : i32, i32
  }
  func.func @transform_12(%arg0: i32, %arg1: i32) -> (i32, i32) {
    %c0_i32 = arith.constant 0 : i32
    %c0_i32_0 = arith.constant 0 : i32
    %c0_i32_1 = arith.constant 0 : i32
    return %c0_i32, %c0_i32_0 : i32, i32
  }
  func.func @transform_13(%arg0: i32, %arg1: i32) -> (i32, i32, i32) {
    %c0_i32 = arith.constant 0 : i32
    %c0_i32_0 = arith.constant 0 : i32
    return %arg0, %arg1, %c0_i32 : i32, i32, i32
  }
}

</mosaic_0001>

<bundles_post_ra>
// kernel: tpu_custom_call.1
= control target key start
LH: loop header
LB: loop body
LE: loop exit
PB: predicated region body
PF: predicated region fallthrough
CT: control target
= control target key end

     0   :  { %s2446_s0 = inlined_call_operand.vmem [shape: f32[2,32,32], index: 0, kind: input, shape index: {}]   ;;  %s2447_s1 = inlined_call_operand.vmem [shape: bf16[2,4,8,32], index: 1, kind: input, shape index: {}]   ;;  %s2448_s2 = inlined_call_operand.vmem [shape: bf16[2,4,32,8], index: 2, kind: input, shape index: {}]   ;;  %s2449_s3 = inlined_call_operand.vmem [shape: bf16[32,32], index: 3, kind: input, shape index: {}]   ;;  %s2450_s4 = inlined_call_operand.vmem [shape: bf16[32,32], index: 4, kind: input, shape index: {}]   ;;  %s2451_s5 = inlined_call_operand.vmem [shape: f32[1,32], index: 5, kind: input, shape index: {}]   ;;  %s2452_s6 = inlined_call_operand.vmem [shape: f32[1,32], index: 6, kind: input, shape index: {}]   ;;  %s2453_s7 = inlined_call_operand.vmem [shape: bf16[32,64], index: 7, kind: input, shape index: {}]   ;;  %s2454_s8 = inlined_call_operand.vmem [shape: f32[1,64], index: 8, kind: input, shape index: {}]   ;;  %s2455_s9 = inlined_call_operand.vmem [shape: bf16[64,32], index: 9, kind: input, shape index: {}]   ;;  %s2456_s10 = inlined_call_operand.vmem [shape: f32[1,32], index: 10, kind: input, shape index: {}]   ;;  %s2457_s11 = inlined_call_operand.vmem [shape: f32[1,32], index: 11, kind: input, shape index: {}]   ;;  %s2458_s12 = inlined_call_operand.vmem [shape: f32[1,32], index: 12, kind: input, shape index: {}]   ;;  %s2459_s13 = inlined_call_operand.hbm [shape: f32[2,32,32], index: 13, kind: output, shape index: {}]  }
   0x1   :  { %2467 = sst [smem:[#allocation12_spill]] %s2449_s3 }
   0x2   :  { %18 = vsyncpa [#allocation3], 0 }
   0x3   :  { %20 = vsyncpa [#allocation3 + $0x1], 0  ;;  %s2112_s25 = smov 0   ;;  %s2114_s26 = smov 0  }
   0x4   :  { %s2116_s27 = smov 0   ;;  %s2118_s28 = smov 0  }
   0x5   :  { %s2120_s29 = smov 0   ;;  %s2122_s30 = smov 0  }
   0x6   :  { %s2124_s14 = smov 0   ;;  %s2126_s15 = smov 0  }
   0x7 LB: > { %2468 = sst [smem:[#allocation5_spill]] %s2002_s25  ;;  %s1585_s16 = sadd.s32 4294967295, %s2030_s15   ;;  %s2030_s15 = sphi %s2126_s15, %s26_s15   ;;  %s2026_s14 = sphi %s2124_s14, %s2485_s14   ;;  %s2022_s30 = sphi %s2122_s30, %s2484_s30   ;;  %s2018_s29 = sphi %s2120_s29, %s2483_s29   ;;  %s2014_s28 = sphi %s2118_s28, %s2482_s28   ;;  %s2010_s27 = sphi %s2116_s27, %s2481_s27   ;;  %s2006_s26 = sphi %s2114_s26, %s2487_s26   ;;  %s2002_s25 = sphi %s2112_s25, %s2486_s25  }
   0x8   : > { %2469 = sst [smem:[#allocation6_spill]] %s2010_s27  ;;  %s1586_s17 = sadd.s32 4294967294, %s2030_s15  }
   0x9   : > { %2470 = sst [smem:[#allocation7_spill]] %s2022_s30  ;;  %s35_s18 = sadd.s32 1, %s2022_s30 }
   0xa   : > { %2471 = sst [smem:[#allocation8_spill]] %s2026_s14  ;;  %p36_p0 = scmp.ge.s32.totalorder %s35_s18, 2 }
   0xb   : > { %s38_s19 = sadd.s32 1, %s2026_s14  ;;  %p347_p1 = scmp.ne.s32.totalorder %s2010_s27, %s2006_s26 }
   0xc   : > { %p348_p2 = scmp.eq.s32.totalorder %s1585_s16, 3  ;;  %s2489_s18 = smov (%p36_p0, %s35_s18), 0 }
   0xd   : > { %2472 = sst [smem:[#allocation9_spill]] %s2489_s18  ;;  %s2491_s19 = smov (!%p36_p0, %s38_s19), %s2026_s14 }
   0xe   : > { %s333_s20 = ssub.s32 %s2022_s30, %s2489_s18  ;;  %p2163_p3 = por %p348_p2, %p347_p1 }
   0xf   : > { %p40_p4 = scmp.ge.s32.totalorder %s2491_s19, 2  ;;  %p353_p5 = scmp.ne.s32.totalorder %s2006_s26, %s2002_s25 }
  0x10   : > { %p354_p6 = scmp.eq.s32.totalorder %s1586_s17, 3  ;;  %p1589_p7 = scmp.ge.s32.totalorder %s2030_s15, 1 }
  0x11   : > { %s2493_s19 = smov (%p40_p4, %s2491_s19), 0  ;;  %p431_p9 = scmp.lt.s32.totalorder %s2030_s15, 5 }
  0x12   : > { %2474 = sst [smem:[#allocation10_spill]] %s2493_s19  ;;  %p2172_p8 = por %p354_p6, %p353_p5 }
  0x13   : > { %s332_s23 = ssub.s32 %s2026_s14, %s2493_s19  ;;  %s337_s24 = sadd.s32 1, %s2010_s27 }
  0x14   : > { %s334_s16 = sor.u32 %s333_s20, %s332_s23  ;;  %p432_p10 = pnand %p1589_p7, %p431_p9 }
  0x15   : > { %p335_p11 = scmp.eq.s32.totalorder %s334_s16, 0  ;;  %s2477_s3 = sld [smem:[#allocation12_spill]] (!%p432_p10)  ;;  %v2032_v1 = vmov (!%p432_p10), 0.0   ;;  %vm2033_vm0 = vmmov (!%p432_p10), 0   ;;  %vm530_vm1 = vcmask (!%p432_p10), 261120   ;;  %vm581_vm2 = vcmask (!%p432_p10), 1043456  }
  0x16   : > { %435 = sbr.rel (%p432_p10) target bundleno = 2663 (0xa67), region = 72  ;;  %1691 = vmatprep.subr.bf16.mxu0 (!%p432_p10), %v2032_v1  ;;  %1699 = vmatprep.subr.bf16.mxu1 (!%p432_p10), %v2032_v1  ;;  %s2194_s23 = sshll.u32 (!%p432_p10), %s2014_s28, 1  ;;  %vm577_vm3 = vcmask (!%p432_p10), 64512   ;;  %vm1141_vm4 = vcmask (!%p432_p10), 130048   ;;  %vm1144_vm5 = vcmask (!%p432_p10), 195584   ;;  %vm1364_vm6 = vcmask (!%p432_p10), 523264  }
  0x17   : > { %s2181_s18 = scalar_select %p335_p11, %s2010_s27, %s337_s24  }
  0x18   : > { %1695 = vmatprep.mubr.msk.bf16.mxu0 (!%p432_p10), %vm2033_vm0, %v2032_v1  ;;  %p490_p12 = scmp.lt.s32.totalorder (!%p432_p10), %s2018_s29, 1  ;;  %p492_p13 = scmp.lt.s32.totalorder (!%p432_p10), %s2194_s23, 3  ;;  %1701 = vmatprep.mubr.msk.bf16.mxu1 (!%p432_p10), %vm2033_vm0, %v2032_v1 }
  0x19   : > { %2476 = sst [smem:[#allocation11_spill]] %s2181_s18  ;;  %s2035_s14 = smov (!%p432_p10), 112  }
  0x1a   : > { %s2036_s18 = smov (!%p432_p10), 104  }
  0x1b   : > { %v1878_v0 = vld [vmem:[%s2477_s3] sm:$0xff] (!%p432_p10)   ;;  %v1879_v2 = vld [vmem:[%s2477_s3 + $0x8] sm:$0xff] (!%p432_p10)  }
  0x1c   : > { %1692 = vmatpush3.bf16.msra.mxu0 (!%p432_p10), %v1878_v0 }
  0x1d   : > { %1693 = vmatprep.subr.bf16.mxu0 %v2032_v1  ;;  %s491_s25 = scalar_select %p490_p12, %s2018_s29, 1 }
  0x1e   : > { %s493_s30 = scalar_select %p492_p13, %s2194_s23, 3 }
  0x1f   : > { %s1592_s24 = sshll.u32 %s491_s25, 2  ;;  %s1656_s16 = sshll.u32 %s491_s25, 6 }
  0x20   : > { %1694 = vmatpush3.bf16.msra.mxu0 %v1879_v2  ;;  %s495_s17 = sadd.s32 %s1592_s24, %s493_s30  ;;  %s2206_s28 = scalar_lea.vmem %s2448_s2, %s1656_s16 }
  0x21   : > { %1727 = vmatprep.subr.bf16.mxu0 %v2032_v1  ;;  %s1593_s19 = sshll.u32 %s495_s17, 3  ;;  %s1655_s3 = sshll.u32 %s491_s25, 4  ;;  %v1880_v25 = vld [vmem:[%s2206_s28] sm:$0xff]   ;;  %v1881_v26 = vld [vmem:[%s2206_s28 + $0x8] sm:$0xff]   ;;  %v1882_v61 = vld [vmem:[%s2206_s28 + $0x10] sm:$0xff]  }
  0x22   : > { %s497_s27 = scalar_lea.vmem %s2446_s0, %s1593_s19  ;;  %s2224_s16 = scalar_lea.vmem %s2447_s1, %s1655_s3  ;;  %v1883_v62 = vld [vmem:[%s2206_s28 + $0x18] sm:$0xff]  }
  0x23   : > { %v2212_v3 = vld [vmem:[%s497_s27] sm:$0xff]  ;;  %v2214_v4 = vld [vmem:[%s497_s27 + $0x8] sm:$0xff]  ;;  %s2034_s27 = smov 120   ;;  %s2466_s17 = smov 8  }
  0x24   : > { %v513_v5 = vpack.c.bf16 %v2214_v4, %v2212_v3  ;;  %v576_v6 = vld [vmem:[%s2224_s16] sm:$0xf]  ;;  %v1614_v8 = vld [vmem:[%s2224_s16 + $0x8] sm:$0xf]  ;;  %v1623_v23 = vld [vmem:[%s2224_s16 + $0xc] sm:$0xf] }
  0x25   : > { %v583_v7 = vsel %vm581_vm2, %v576_v6, 0  ;;  %v853_v9 = vsel %vm581_vm2, %v1614_v8, 0  ;;  %v988_v24 = vsel %vm581_vm2, %v1623_v23, 0  ;;  %v1605_v38 = vld [vmem:[%s2224_s16 + $0x4] sm:$0xf]  ;;  %s2038_s3 = smov 16  }
  0x26   : > { %1696 = vmatmul.mubr.msk.bf16.vlgmr.msra.gmra.mrb[0].mxu0 %vm530_vm1, %v513_v5  ;;  %1700 = vmatpush3.bf16.msra.mxu1 %v583_v7  ;;  %v718_v42 = vsel %vm581_vm2, %v1605_v38, 0  ;;  %s2039_s30 = smov 24  }
  0x27   : > { %1729 = vmatprep.mubr.msk.bf16.mxu0 %vm2033_vm0, %v2032_v1  ;;  %1705 = vmatprep.subr.bf16.mxu1 %v2032_v1 }
  0x28   : > { %1728 = vmatpush3.bf16.msra.mxu0 %v853_v9 }
  0x29   : > { %1741 = vmatprep.subr.bf16.mxu0 %v2032_v1 }
  0xf9   : > { %v568_v10 = vpop.f32.mrb[0].mxu0 }
  0xfa   : > { %v1697_v11 = vpop.f32.mrb[1].mxu0 }
  0xfb   : > { %v571_v12 = vpop.f32.mrb[2].mxu0 }
  0xfc   : > { %v575_v13 = vpack.c.bf16 %v571_v12, %v568_v10  ;;  %v1698_v14 = vpop.f32.mrb[3].mxu0 }
  0xfe   : > { %712 = vrot.lane.b32.xlu1 %v575_v13, %s2034_s27  ;;  %1702 = vmatmul.mubr.msk.bf16.vlgmr.msra.gmra.mrb[0].mxu1 %vm577_vm3, %v575_v13 }
  0xff   : > { %1709 = vmatprep.mubr.msk.bf16.mxu1 %vm2033_vm0, %v2032_v1  ;;  %1706 = vmatpush3.bf16.msra.mxu1 %v1880_v25 }
 0x100   : > { %1707 = vmatprep.subr.bf16.mxu1 %v2032_v1 }
 0x102   : > { %847 = vrot.lane.b32.xlu1 %v575_v13, %s2035_s14 }
 0x103   : > { %1708 = vmatpush3.bf16.msra.mxu1 %v1881_v26  ;;  %v1885_v26 = vld [vmem:[%s2206_s28 + $0x28] sm:$0xff]  }
 0x104   : > { %1713 = vmatprep.subr.bf16.mxu1 %v2032_v1 }
 0x170   : > { %v713_v15 = vpop.permute.xlu1 %712 }
 0x174   : > { %v848_v16 = vpop.permute.xlu1 %847 }
 0x175   : > { %1730 = vmatmul.mubr.msk.bf16.vlgmr.msra.gmra.mrb[4].mxu0 %vm577_vm3, %v848_v16 }
 0x176   : > { %1743 = vmatprep.mubr.msk.bf16.mxu0 %vm2033_vm0, %v2032_v1  ;;  %1742 = vmatpush3.bf16.msra.mxu0 %v988_v24 }
 0x177   : > { %1755 = vmatprep.subr.bf16.mxu0 %v2032_v1 }
 0x1d1   : > { %v619_v17 = vpop.f32.mrb[0].mxu1 }
 0x1d2   : > { %v1703_v18 = vpop.f32.mrb[1].mxu1  ;;  %v626_v19 = vsel %vm530_vm1, %v619_v17, -inf }
 0x1d3   : > { %627 = vmax.xlane.f32.xlu0 %v626_v19  ;;  %v622_v20 = vpop.f32.mrb[2].mxu1 }
 0x1d4   : > { %v1704_v21 = vpop.f32.mrb[3].mxu1  ;;  %v629_v22 = vsel %vm530_vm1, %v622_v20, -inf }
 0x1d5   : > { %v1884_v21 = vld [vmem:[%s2206_s28 + $0x20] sm:$0xff]  }
 0x1d7   : > { %630 = vmax.xlane.f32.xlu0 %v629_v22 }
 0x1ed   : > { %982 = vrot.lane.b32.xlu0 %v575_v13, %s2036_s18 }
 0x248   : > { %v2247_v27 = vpop.f32.mrb[4].mxu0 }
 0x249   : > { %v1731_v28 = vpop.f32.mrb[5].mxu0  ;;  %v896_v57 = vsel %vm530_vm1, %v2247_v27, -inf }
 0x24a   : > { %v2249_v29 = vpop.f32.mrb[6].mxu0 }
 0x24b   : > { %v1732_v30 = vpop.f32.mrb[7].mxu0  ;;  %v899_v58 = vsel %vm530_vm1, %v2249_v29, -inf }
 0x260   : > { %v628_v31 = vpop.xlane.xlu0 %627 }
 0x261   : > { %v632_v32 = vsub.f32 %v619_v17, %v628_v31  ;;  %v1886_v31 = vld [vmem:[%s2206_s28 + $0x30] sm:$0xff]  }
 0x263   : > { %v634_v33 = vmul.f32 1.442695, %v632_v32 }
 0x264   : > { %v631_v34 = vpop.xlane.xlu0 %630 }
 0x265   : > { %v633_v35 = vsub.f32 %v622_v20, %v631_v34  ;;  %1896 = vpow2.f32 %v634_v33 }
 0x267   : > { %v636_v36 = vmul.f32 1.442695, %v633_v35  ;;  %v1887_v35 = vld [vmem:[%s2206_s28 + $0x38] sm:$0xff]  }
 0x268   : > { %v983_v37 = vpop.permute.xlu0 %982 }
 0x269   : > { %1898 = vpow2.f32 %v636_v36  ;;  %1744 = vmatmul.mubr.msk.bf16.vlgmr.msra.gmra.mrb[8].mxu0 %vm577_vm3, %v983_v37 }
 0x26a   : > { %1759 = vmatprep.mubr.msk.bf16.mxu0 %vm2033_vm0, %v2032_v1 }
 0x26f   : > { %v2255_v39 = vpop.eup %1896 }
 0x273   : > { %v2257_v40 = vpop.eup %1898 }
 0x274   : > { %v644_v41 = vpack.c.bf16 %v2257_v40, %v2255_v39 }
 0x276   : > { %1710 = vmatmul.mubr.msk.bf16.vlgmr.msra.gmra.mrb[4].mxu1 %vm530_vm1, %v644_v41  ;;  %v638_v41 = vsel %vm530_vm1, %v2255_v39, 0.0 }
 0x277   : > { %1714 = vmatpush3.bf16.msra.mxu1 %v718_v42  ;;  %1715 = vmatprep.mubr.msk.bf16.mxu1 %vm2033_vm0, %v2032_v1  ;;  %v641_v42 = vsel %vm530_vm1, %v2257_v40, 0.0 }
 0x278   : > { %1719 = vmatprep.subr.bf16.mxu1 %v2032_v1 }
 0x27e   : > { %1716 = vmatmul.mubr.msk.bf16.vlgmr.msra.gmra.mrb[8].mxu1 %vm577_vm3, %v713_v15 }
 0x27f   : > { %1723 = vmatprep.mubr.msk.bf16.mxu1 %vm2033_vm0, %v2032_v1  ;;  %1720 = vmatpush3.bf16.msra.mxu1 %v1882_v61 }
 0x280   : > { %1721 = vmatprep.subr.bf16.mxu1 %v2032_v1 }
 0x283   : > { %1722 = vmatpush3.bf16.msra.mxu1 %v1883_v62 }
 0x284   : > { %1733 = vmatprep.subr.bf16.mxu1 %v2032_v1 }
 0x33c   : > { %v1024_v43 = vpop.f32.mrb[8].mxu0 }
 0x33d   : > { %v1745_v44 = vpop.f32.mrb[9].mxu0  ;;  %v1031_v59 = vsel %vm530_vm1, %v1024_v43, -inf }
 0x33e   : > { %v1027_v45 = vpop.f32.mrb[10].mxu0 }
 0x33f   : > { %v1746_v46 = vpop.f32.mrb[11].mxu0  ;;  %v1034_v60 = vsel %vm530_vm1, %v1027_v45, -inf }
 0x349   : > { %v2269_v47 = vpop.f32.mrb[4].mxu1 }
 0x34a   : > { %v1711_v48 = vpop.f32.mrb[5].mxu1 }
 0x34b   : > { %v2271_v49 = vpop.f32.mrb[6].mxu1 }
 0x34c   : > { %v1712_v50 = vpop.f32.mrb[7].mxu1 }
 0x351   : > { %v754_v51 = vpop.f32.mrb[8].mxu1 }
 0x352   : > { %v1717_v52 = vpop.f32.mrb[9].mxu1  ;;  %v761_v53 = vsel %vm530_vm1, %v754_v51, -inf }
 0x353   : > { %762 = vmax.xlane.f32.xlu1 %v761_v53  ;;  %v757_v54 = vpop.f32.mrb[10].mxu1 }
 0x354   : > { %v1718_v55 = vpop.f32.mrb[11].mxu1  ;;  %v764_v56 = vsel %vm530_vm1, %v757_v54, -inf }
 0x355   : > { %765 = vmax.xlane.f32.xlu0 %v764_v56  ;;  %v1888_v56 = vld [vmem:[%s2450_s4] sm:$0xff]  }
 0x356   : > { %1756 = vmatpush3.bf16.msra.mxu0 %v1888_v56  ;;  %v1891_v56 = vld [vmem:[%s2453_s7 + $0x8] sm:$0xff]  }
 0x357   : > { %897 = vmax.xlane.f32.xlu1 %v896_v57  ;;  %1757 = vmatprep.subr.bf16.mxu0 %v2032_v1 }
 0x35b   : > { %900 = vmax.xlane.f32.xlu1 %v899_v58 }
 0x35f   : > { %1032 = vmax.xlane.f32.xlu1 %v1031_v59 }
 0x363   : > { %1035 = vmax.xlane.f32.xlu1 %v1034_v60 }
 0x3e0   : > { %v763_v63 = vpop.xlane.xlu1 %762 }
 0x3e1   : > { %v767_v0 = vsub.f32 %v754_v51, %v763_v63 }
 0x3e2   : > { %v766_v2 = vpop.xlane.xlu0 %765 }
 0x3e3   : > { %v769_v5 = vmul.f32 1.442695, %v767_v0  ;;  %v768_v6 = vsub.f32 %v757_v54, %v766_v2 }
 0x3e4   : > { %v898_v7 = vpop.xlane.xlu1 %897 }
 0x3e5   : > { %v771_v8 = vmul.f32 1.442695, %v768_v6  ;;  %v902_v9 = vsub.f32 %v2247_v27, %v898_v7  ;;  %1900 = vpow2.f32 %v769_v5  ;;  %v1889_v6 = vld [vmem:[%s2450_s4 + $0x8] sm:$0xff]  }
 0x3e6   : > { %1758 = vmatpush3.bf16.msra.mxu0 %v1889_v6 }
 0x3e7   : > { %1902 = vpow2.f32 %v771_v8  ;;  %v904_v10 = vmul.f32 1.442695, %v902_v9  ;;  %1771 = vmatprep.subr.bf16.mxu0 %v2032_v1 }
 0x3e8   : > { %v901_v11 = vpop.xlane.xlu1 %900 }
 0x3e9   : > { %1904 = vpow2.f32 %v904_v10  ;;  %v903_v12 = vsub.f32 %v2249_v29, %v901_v11 }
 0x3eb   : > { %v906_v13 = vmul.f32 1.442695, %v903_v12 }
 0x3ec   : > { %v1033_v14 = vpop.xlane.xlu1 %1032 }
 0x3ed   : > { %1906 = vpow2.f32 %v906_v13  ;;  %v1037_v15 = vsub.f32 %v1024_v43, %v1033_v14 }
 0x3ef   : > { %v1039_v16 = vmul.f32 1.442695, %v1037_v15  ;;  %v1901_v17 = vpop.eup %1900 }
 0x3f0   : > { %v1036_v18 = vpop.xlane.xlu1 %1035  ;;  %v773_v30 = vsel %vm530_vm1, %v1901_v17, 0.0 }
 0x3f1   : > { %v1903_v19 = vpop.eup %1902  ;;  %1908 = vpow2.f32 %v1039_v16  ;;  %v1038_v20 = vsub.f32 %v1027_v45, %v1036_v18 }
 0x3f2   : > { %v779_v22 = vpack.c.bf16 %v1903_v19, %v1901_v17  ;;  %v776_v33 = vsel %vm530_vm1, %v1903_v19, 0.0 }
 0x3f3   : > { %v1905_v23 = vpop.eup %1904  ;;  %v1041_v24 = vmul.f32 1.442695, %v1038_v20 }
 0x3f4   : > { %1724 = vmatmul.mubr.msk.bf16.vlgmr.msra.gmra.mrb[12].mxu1 %vm530_vm1, %v779_v22  ;;  %v908_v25 = vsel %vm530_vm1, %v1905_v23, 0.0 }
 0x3f5   : > { %1910 = vpow2.f32 %v1041_v24  ;;  %1734 = vmatpush3.bf16.msra.mxu1 %v1884_v21  ;;  %909 = vadd.xlane.f32.xlu1 %v908_v25 }
 0x3f6   : > { %1735 = vmatprep.subr.bf16.mxu1 %v2032_v1  ;;  %1737 = vmatprep.mubr.msk.bf16.mxu1 %vm2033_vm0, %v2032_v1 }
 0x3f7   : > { %v1907_v27 = vpop.eup %1906 }
 0x3f8   : > { %v911_v28 = vsel %vm530_vm1, %v1907_v27, 0.0  ;;  %v914_v29 = vpack.c.bf16 %v1907_v27, %v1905_v23 }
 0x3f9   : > { %1736 = vmatpush3.bf16.msra.mxu1 %v1885_v26  ;;  %912 = vadd.xlane.f32.xlu0 %v911_v28 }
 0x3fa   : > { %774 = vadd.xlane.f32.xlu1 %v773_v30  ;;  %1747 = vmatprep.subr.bf16.mxu1 %v2032_v1 }
 0x3fb   : > { %v1909_v32 = vpop.eup %1908 }
 0x3fc   : > { %1738 = vmatmul.mubr.msk.bf16.vlgmr.msra.gmra.mrb[16].mxu1 %vm530_vm1, %v914_v29  ;;  %v1043_v34 = vsel %vm530_vm1, %v1909_v32, 0.0 }
 0x3fd   : > { %1748 = vmatpush3.bf16.msra.mxu1 %v1886_v31  ;;  %777 = vadd.xlane.f32.xlu0 %v776_v33 }
 0x3fe   : > { %1044 = vadd.xlane.f32.xlu1 %v1043_v34  ;;  %1749 = vmatprep.subr.bf16.mxu1 %v2032_v1 }
 0x3ff   : > { %v1911_v36 = vpop.eup %1910  ;;  %1751 = vmatprep.mubr.msk.bf16.mxu1 %vm2033_vm0, %v2032_v1 }
 0x400   : > { %v1046_v37 = vsel %vm530_vm1, %v1911_v36, 0.0  ;;  %v1049_v38 = vpack.c.bf16 %v1911_v36, %v1909_v32 }
 0x401   : > { %1750 = vmatpush3.bf16.msra.mxu1 %v1887_v35  ;;  %1047 = vadd.xlane.f32.xlu0 %v1046_v37 }
 0x402   : > { %639 = vadd.xlane.f32.xlu1 %v638_v41  ;;  %1763 = vmatprep.subr.bf16.mxu1 %v2032_v1 }
 0x404   : > { %1752 = vmatmul.mubr.msk.bf16.vlgmr.msra.gmra.mrb[20].mxu1 %vm530_vm1, %v1049_v38 }
 0x405   : > { %642 = vadd.xlane.f32.xlu0 %v641_v42  ;;  %1767 = vmatprep.mubr.msk.bf16.mxu1 %vm2033_vm0, %v2032_v1 }
 0x482   : > { %v910_v43 = vpop.xlane.xlu1 %909 }
 0x486   : > { %v913_v44 = vpop.xlane.xlu0 %912 }
 0x487   : > { %v775_v45 = vpop.xlane.xlu1 %774 }
 0x488   : > { %1912 = vrcp.f32 %v775_v45 }
 0x48a   : > { %v778_v46 = vpop.xlane.xlu0 %777 }
 0x48b   : > { %1914 = vrcp.f32 %v778_v46  ;;  %v1045_v55 = vpop.xlane.xlu1 %1044 }
 0x48c   : > { %1916 = vrcp.f32 %v910_v43 }
 0x48d   : > { %1918 = vrcp.f32 %v913_v44 }
 0x48e   : > { %v1048_v57 = vpop.xlane.xlu0 %1047  ;;  %1920 = vrcp.f32 %v1045_v55  ;;  %v1890_v55 = vld [vmem:[%s2453_s7] sm:$0xff]  }
 0x48f   : > { %1922 = vrcp.f32 %v1048_v57  ;;  %v640_v17 = vpop.xlane.xlu1 %639  ;;  %1764 = vmatpush3.bf16.msra.mxu1 %v1890_v55  ;;  %v1892_v57 = vld [vmem:[%s2455_s9] sm:$0xff]  }
 0x490   : > { %1924 = vrcp.f32 %v640_v17  ;;  %1765 = vmatprep.subr.bf16.mxu1 %v2032_v1  ;;  %v1637_v17 = vld [vmem:[%s2454_s8] ss:$0 sm:$0xff] }
 0x491   : > { %v1648_v55 = vld [vmem:[%s2458_s12] ss:$0 sm:$0xff] }
 0x492   : > { %v1913_v48 = vpop.eup %1912  ;;  %v643_v18 = vpop.xlane.xlu0 %642 }
 0x493   : > { %1926 = vrcp.f32 %v643_v18  ;;  %1766 = vmatpush3.bf16.msra.mxu1 %v1891_v56 }
 0x495   : > { %v1915_v51 = vpop.eup %1914 }
 0x496   : > { %v1917_v60 = vpop.eup %1916 }
 0x497   : > { %v1919_v62 = vpop.eup %1918 }
 0x498   : > { %v1921_v9 = vpop.eup %1920 }
 0x499   : > { %v1923_v11 = vpop.eup %1922 }
 0x49a   : > { %v1925_v20 = vpop.eup %1924 }
 0x49b   : > { %v707_v27 = vmul.f32 %v1925_v20, %v2269_v47 }
 0x49d   : > { %v1927_v22 = vpop.eup %1926 }
 0x49e   : > { %v708_v28 = vmul.f32 %v1927_v22, %v2271_v49 }
 0x4c7   : > { %v834_v39 = vpop.f32.mrb[12].mxu1 }
 0x4c8   : > { %v1725_v50 = vpop.f32.mrb[13].mxu1  ;;  %v843_v53 = vmul.f32 %v1913_v48, %v834_v39 }
 0x4c9   : > { %v837_v52 = vpop.f32.mrb[14].mxu1 }
 0x4ca   : > { %v844_v54 = vmul.f32 %v1915_v51, %v837_v52  ;;  %v1726_v40 = vpop.f32.mrb[15].mxu1 }
 0x4cc   : > { %v1863_v58 = vpack.i.bf16 %v844_v54, %v843_v53 }
 0x4ce   : > { %1864 = vrot.lane.b32.xlu1 %v1863_v58, %s2466_s17  ;;  %v1893_v58 = vld [vmem:[%s2455_s9 + $0x8] sm:$0xff]   ;;  %s2040_s17 = smov [#allocation2]  }
 0x4cf   : > { %v969_v59 = vpop.f32.mrb[16].mxu1 }
 0x4d0   : > { %v1739_v61 = vpop.f32.mrb[17].mxu1  ;;  %v978_v0 = vmul.f32 %v1917_v60, %v969_v59 }
 0x4d1   : > { %v972_v63 = vpop.f32.mrb[18].mxu1 }
 0x4d2   : > { %v979_v2 = vmul.f32 %v1919_v62, %v972_v63  ;;  %v1740_v5 = vpop.f32.mrb[19].mxu1 }
 0x4d3   : > { %v1635_v5 = vld [vmem:[%s2451_s5] ss:$0 sm:$0xff] }
 0x4d4   : > { %v1868_v7 = vpack.i.bf16 %v979_v2, %v978_v0 }
 0x4d6   : > { %1869 = vrot.lane.b32.xlu0 %v1868_v7, %s2038_s3  ;;  %s486_s3 = sand.u32 1, %s2006_s26  }
 0x4d7   : > { %v1104_v8 = vpop.f32.mrb[20].mxu1  ;;  %s1590_s24 = sshll.u32 %s486_s3, 4 }
 0x4d8   : > { %v1753_v10 = vpop.f32.mrb[21].mxu1  ;;  %v1113_v13 = vmul.f32 %v1921_v9, %v1104_v8  ;;  %s488_s20 = scalar_lea.vmem [#allocation2], %s1590_s24  ;;  %s1940_s24 = sshll.u32 %s2040_s17, 4  ;;  %s1941_s24 = int_to_ptr.vmem [resolvable:$false] %s1940_s24 }
 0x4d9   : > { %v1107_v12 = vpop.f32.mrb[22].mxu1  ;;  %v1636_v10 = vld [vmem:[%s2452_s6] ss:$0 sm:$0xff]  ;;  %s1473_s28 = sshll.u32 %s488_s20, 4  ;;  %s1942_s27 = scalar_lea.vmem %s1941_s24, 512  ;;  %s2390_s28 = int_to_ptr.vmem [resolvable:$true] %s1473_s28 }
 0x4da   : > { %v1114_v14 = vmul.f32 %v1923_v11, %v1107_v12  ;;  %v1754_v15 = vpop.f32.mrb[23].mxu1  ;;  %p1943_p4 = scmp.lt.s32.totalorder %s2390_s28, %s1941_s24 }
 0x4db   : > { %v1894_v15 = vld [vmem:[%s2455_s9 + $0x10] sm:$0xff]  }
 0x4dc   : > { %v1873_v16 = vpack.i.bf16 %v1114_v14, %v1113_v13 }
 0x4de   : > { %1874 = vrot.lane.b32.xlu1 %v1873_v16, %s2039_s30  ;;  %v1895_v16 = vld [vmem:[%s2455_s9 + $0x18] sm:$0xff]   ;;  %s1651_s30 = sshll.u32 %s2018_s29, 2 }
 0x4df   : > { %s1470_s14 = sadd.s32 %s1651_s30, %s2194_s23  ;;  %s2393_s23 = scalar_lea.sflag [#allocation3], %s486_s3 }
 0x4e0   : > { %s1652_s25 = sshll.u32 %s1470_s14, 7  ;;  %s1936_s30 = scalar_lea.vmem %s2390_s28, 256 }
 0x4e1   : > { %s2387_s16 = scalar_lea.hbm %s2459_s13, %s1652_s25  ;;  %p1937_p0 = scmp.ne.s32.totalorder %s2390_s28, %s1936_s30 }
 0x4e2   : > { %p1944_p5 = scmp.lt.s32.totalorder %s1942_s27, %s1936_s30 }
 0x4e3   : > { %p1938_p1 = pnand %p1937_p0, %p2163_p3 }
 0x4e4   : > { %p1945_p6 = por %p1944_p5, %p1943_p4 }
 0x4e5   : > { %p1939_p2 = pneg %p1938_p1 }
 0x4e7   : > { %p1946_p7 = pnand %p1945_p6, %p1939_p2 }
 0x540   : > { %v1865_v19 = vpop.permute.xlu1 %1864 }
 0x541   : > { %v1867_v23 = vunpack.i.h.bf16 %v1865_v19  ;;  %v1866_v24 = vunpack.i.l.bf16 %v1865_v19 }
 0x543   : > { %v1140_v30 = vsel %vm577_vm3, %v708_v28, %v1867_v23  ;;  %v1139_v31 = vsel %vm577_vm3, %v707_v27, %v1866_v24 }
 0x548   : > { %v1870_v21 = vpop.permute.xlu0 %1869 }
 0x549   : > { %v1872_v25 = vunpack.i.h.bf16 %v1870_v21  ;;  %v1871_v26 = vunpack.i.l.bf16 %v1870_v21 }
 0x54b   : > { %v1142_v34 = vsel %vm1141_vm4, %v1139_v31, %v1871_v26  ;;  %v1143_v35 = vsel %vm1141_vm4, %v1140_v30, %v1872_v25 }
 0x550   : > { %v1875_v29 = vpop.permute.xlu1 %1874 }
 0x551   : > { %v1877_v32 = vunpack.i.h.bf16 %v1875_v29  ;;  %v1876_v33 = vunpack.i.l.bf16 %v1875_v29 }
 0x553   : > { %v1145_v36 = vsel %vm1144_vm5, %v1142_v34, %v1876_v33  ;;  %v1146_v37 = vsel %vm1144_vm5, %v1143_v35, %v1877_v32 }
 0x554   : > { %v1147_v38 = vpack.c.bf16 %v1146_v37, %v1145_v36 }
 0x556   : > { %1760 = vmatmul.mubr.msk.bf16.vlgmr.msra.gmra.mrb[12].mxu0 %vm530_vm1, %v1147_v38 }
 0x557   : > { %1779 = vmatprep.mubr.msk.bf16.mxu0 %vm2033_vm0, %v2032_v1  ;;  %1772 = vmatpush3.bf16.msra.mxu0 %v1892_v57 }
 0x558   : > { %1773 = vmatprep.subr.bf16.mxu0 %v2032_v1 }
 0x55b   : > { %1774 = vmatpush3.bf16.msra.mxu0 %v1893_v58 }
 0x55c   : > { %1775 = vmatprep.subr.bf16.mxu0 %v2032_v1 }
 0x55f   : > { %1776 = vmatpush3.bf16.msra.mxu0 %v1894_v15 }
 0x560   : > { %1777 = vmatprep.subr.bf16.mxu0 %v2032_v1  ;;  %v1641_v1 = vld [vmem:[%s2456_s10] ss:$0 sm:$0xff] }
 0x563   : > { %1778 = vmatpush3.bf16.msra.mxu0 %v1895_v16 }
 0x629   : > { %v1201_v47 = vpop.f32.mrb[12].mxu0 }
 0x62a   : > { %v1208_v49 = vadd.f32 %v1201_v47, %v2212_v3  ;;  %v1761_v41 = vpop.f32.mrb[13].mxu0 }
 0x62b   : > { %v1204_v42 = vpop.f32.mrb[14].mxu0 }
 0x62c   : > { %v1209_v43 = vadd.f32 %v1204_v42, %v2214_v4  ;;  %v1762_v44 = vpop.f32.mrb[15].mxu0  ;;  %v1212_v45 = vsel %vm530_vm1, %v1208_v49, 0.0 }
 0x62d   : > { %1213 = vadd.xlane.f32.xlu1 %v1212_v45 }
 0x62e   : > { %v1215_v46 = vsel %vm530_vm1, %v1209_v43, 0.0 }
 0x62f   : > { %1216 = vadd.xlane.f32.xlu0 %v1215_v46 }
 0x6ba   : > { %v1214_v39 = vpop.xlane.xlu1 %1213 }
 0x6bb   : > { %v1218_v48 = vmul.f32 0.03125, %v1214_v39 }
 0x6bc   : > { %v1217_v50 = vpop.xlane.xlu0 %1216 }
 0x6bd   : > { %v1220_v51 = vsub.f32 %v1208_v49, %v1218_v48  ;;  %v1219_v52 = vmul.f32 0.03125, %v1217_v50 }
 0x6bf   : > { %v1221_v53 = vsub.f32 %v1209_v43, %v1219_v52  ;;  %v1222_v54 = vmul.f32 %v1220_v51, %v1220_v51 }
 0x6c1   : > { %v1224_v3 = vsel %vm530_vm1, %v1222_v54, 0.0  ;;  %v1223_v40 = vmul.f32 %v1221_v53, %v1221_v53 }
 0x6c2   : > { %1225 = vadd.xlane.f32.xlu0 %v1224_v3  ;;  %v1647_v3 = vld [vmem:[%s2457_s11] ss:$0 sm:$0xff] }
 0x6c3   : > { %v1227_v4 = vsel %vm530_vm1, %v1223_v40, 0.0 }
 0x6c4   : > { %1228 = vadd.xlane.f32.xlu1 %v1227_v4 }
 0x74f   : > { %v1226_v59 = vpop.xlane.xlu0 %1225 }
 0x750   : > { %v1230_v60 = vmul.f32 0.03125, %v1226_v59 }
 0x751   : > { %v1229_v61 = vpop.xlane.xlu1 %1228 }
 0x752   : > { %v1232_v62 = vadd.f32 1e-05, %v1230_v60  ;;  %v1231_v63 = vmul.f32 0.03125, %v1229_v61 }
 0x754   : > { %1928 = vrsqrt.f32 %v1232_v62  ;;  %v1233_v0 = vadd.f32 1e-05, %v1231_v63 }
 0x756   : > { %1930 = vrsqrt.f32 %v1233_v0 }
 0x75e   : > { %v1929_v2 = vpop.eup %1928 }
 0x75f   : > { %v1236_v6 = vmul.f32 %v1929_v2, %v1220_v51 }
 0x760   : > { %v1931_v7 = vpop.eup %1930 }
 0x761   : > { %v1244_v8 = vmul.f32 %v1635_v5, %v1236_v6  ;;  %v1237_v9 = vmul.f32 %v1931_v7, %v1221_v53 }
 0x763   : > { %v1245_v11 = vmul.f32 %v1635_v5, %v1237_v9  ;;  %v1252_v12 = vadd.f32 %v1636_v10, %v1244_v8 }
 0x765   : > { %v1253_v13 = vadd.f32 %v1636_v10, %v1245_v11 }
 0x767   : > { %v1254_v14 = vpack.c.bf16 %v1253_v13, %v1252_v12 }
 0x769   : > { %1768 = vmatmul.mubr.msk.bf16.vlgmr.msra.gmra.mrb[24].mxu1 %vm530_vm1, %v1254_v14 }
 0x83c   : > { %v1315_v18 = vpop.f32.mrb[24].mxu1 }
 0x83d   : > { %v1316_v19 = vadd.f32 %v1637_v17, %v1315_v18  ;;  %v1769_v20 = vpop.f32.mrb[25].mxu1 }
 0x83e   : > { %v1318_v21 = vpop.f32.mrb[26].mxu1 }
 0x83f   : > { %v1319_v22 = vadd.f32 %v1637_v17, %v1318_v21  ;;  %v1770_v23 = vpop.f32.mrb[27].mxu1  ;;  %v1322_v24 = vmax.f32 %v1316_v19, 0.0 }
 0x841   : > { %v1323_v25 = vmax.f32 %v1319_v22, 0.0 }
 0x843   : > { %v1324_v26 = vpack.c.bf16 %v1323_v25, %v1322_v24 }
 0x845   : > { %1780 = vmatmul.mubr.msk.bf16.vlgmr.msra.gmra.mrb[16].mxu0 %vm1364_vm6, %v1324_v26 }
 0x918   : > { %v1402_v27 = vpop.f32.mrb[16].mxu0 }
 0x919   : > { %v1403_v28 = vadd.f32 %v1641_v1, %v1402_v27  ;;  %v1781_v29 = vpop.f32.mrb[17].mxu0 }
 0x91a   : > { %v1405_v30 = vpop.f32.mrb[18].mxu0 }
 0x91b   : > { %v1406_v31 = vadd.f32 %v1641_v1, %v1405_v30  ;;  %v1782_v32 = vpop.f32.mrb[19].mxu0  ;;  %v1409_v33 = vadd.f32 %v1403_v28, %v1252_v12 }
 0x91d   : > { %v1413_v34 = vsel %vm530_vm1, %v1409_v33, 0.0  ;;  %v1410_v35 = vadd.f32 %v1406_v31, %v1253_v13 }
 0x91e   : > { %1414 = vadd.xlane.f32.xlu0 %v1413_v34 }
 0x91f   : > { %v1416_v36 = vsel %vm530_vm1, %v1410_v35, 0.0 }
 0x920   : > { %1417 = vadd.xlane.f32.xlu1 %v1416_v36 }
 0x9ab   : > { %v1415_v37 = vpop.xlane.xlu0 %1414 }
 0x9ac   : > { %v1419_v38 = vmul.f32 0.03125, %v1415_v37 }
 0x9ad   : > { %v1418_v47 = vpop.xlane.xlu1 %1417 }
 0x9ae   : > { %v1421_v49 = vsub.f32 %v1409_v33, %v1419_v38  ;;  %v1420_v41 = vmul.f32 0.03125, %v1418_v47 }
 0x9b0   : > { %v1422_v42 = vsub.f32 %v1410_v35, %v1420_v41  ;;  %v1423_v43 = vmul.f32 %v1421_v49, %v1421_v49 }
 0x9b2   : > { %v1425_v44 = vsel %vm530_vm1, %v1423_v43, 0.0  ;;  %v1424_v45 = vmul.f32 %v1422_v42, %v1422_v42 }
 0x9b3   : > { %1426 = vadd.xlane.f32.xlu0 %v1425_v44 }
 0x9b4   : > { %v1428_v46 = vsel %vm530_vm1, %v1424_v45, 0.0 }
 0x9b5   : > { %1429 = vadd.xlane.f32.xlu1 %v1428_v46 }
 0xa40   : > { %v1427_v39 = vpop.xlane.xlu0 %1426 }
 0xa41   : > { %v1431_v48 = vmul.f32 0.03125, %v1427_v39 }
 0xa42   : > { %v1430_v50 = vpop.xlane.xlu1 %1429 }
 0xa43   : > { %v1433_v51 = vadd.f32 1e-05, %v1431_v48  ;;  %v1432_v52 = vmul.f32 0.03125, %v1430_v50 }
 0xa45   : > { %1932 = vrsqrt.f32 %v1433_v51  ;;  %v1434_v53 = vadd.f32 1e-05, %v1432_v52 }
 0xa47   : > { %1934 = vrsqrt.f32 %v1434_v53 }
 0xa4f   : > { %v1933_v54 = vpop.eup %1932 }
 0xa50   : > { %v1437_v40 = vmul.f32 %v1933_v54, %v1421_v49 }
 0xa51   : > { %v1935_v4 = vpop.eup %1934 }
 0xa52   : > { %v1445_v56 = vmul.f32 %v1647_v3, %v1437_v40  ;;  %v1438_v57 = vmul.f32 %v1935_v4, %v1422_v42 }
 0xa54   : > { %v1453_v58 = vadd.f32 %v1648_v55, %v1445_v56  ;;  %v1446_v59 = vmul.f32 %v1647_v3, %v1438_v57 }
 0xa56   : > { %v1454_v60 = vadd.f32 %v1648_v55, %v1446_v59  ;;  %1455 = vst.msk [vmem:[%s488_s20] sm:$0xff] %vm530_vm1, %v1453_v58 }
 0xa58   : > { %1456 = vst.msk [vmem:[%s488_s20 + $0x8] sm:$0xff] %vm530_vm1, %v1454_v60 }
 0xa59   : > { %1949 = shalt.err (!%p1946_p7)
}
 0xa5a   : > { %s1950_s3 = scalar_lea.hbm %s2387_s16, 256  ;;  %s1954_s19 = scalar_lea.hbm %s2459_s13, 1024 }
 0xa5b   : > { %p1951_p9 = scmp.ne.s32.totalorder %s2387_s16, %s1950_s3  ;;  %p1955_p12 = scmp.lt.u32.totalorder %s2387_s16, %s2459_s13 }
 0xa5c   : > { %p1956_p13 = scmp.lt.u32.totalorder %s1954_s19, %s1950_s3  ;;  %p1958_p1 = scmp.lt.u32.totalorder %s1950_s3, %s2387_s16 }
 0xa5d   : > { %p1952_p10 = pnand %p1951_p9, %p2163_p3 }
 0xa5e   : > { %p1957_p0 = por %p1956_p13, %p1955_p12 }
 0xa5f   : > { %p1953_p11 = pneg %p1952_p10 }
 0xa60   : > { %p1959_p2 = por %p1958_p1, %p1957_p0 }
 0xa62   : > { %p1960_p4 = pnand %p1959_p2, %p1953_p11 }
 0xa64   : > { %1963 = shalt.err (!%p1960_p4)
}
 0xa65   : > { %s2041_s29 = smov 128   ;;  %s2478_s30 = smov 8  }
 0xa66   : > { %1783 = dma.vmem_to_hbm [thread:$0]  (%p2163_p3), %s2390_s28, 256, %s2387_s16, %s2393_s23, %s2041_s29, %s2041_s29, %s2478_s30  }
 0xa67 PF: > { %s2479_s17 = sld [smem:[#allocation5_spill]]  ;;  %p1789_p5 = scmp.ge.s32.totalorder %s2030_s15, 2 }
 0xa69   : > { %p1786_p6 = pnand %p1789_p5, %p2172_p8 }
 0xa6d   : > { %s1488_s24 = sand.u32 1, %s2479_s17  }
 0xa6e   : > { %s1489_s27 = scalar_lea.sflag [#allocation3], %s1488_s24 }
 0xa6f   : > { %1997 = dma.done.wait (!%p1786_p6), %s1489_s27, 256  }
 0xa70   : > { %1999 = vsyncadd (!%p1786_p6), %s1489_s27, 4294967040  ;;  %s26_s15 = sadd.s32 1, %s2030_s15   ;;  %s2480_s21 = sld [smem:[#allocation6_spill]] }
 0xa71   : > { %p23_p7 = scmp.ge.s32.totalorder %s26_s15, 6   ;;  %s2481_s27 = sld [smem:[#allocation11_spill]] }
 0xa72   : > { %s2482_s28 = sld [smem:[#allocation7_spill]]  ;;  %s2483_s29 = sld [smem:[#allocation8_spill]] }
 0xa73   : > { %s2484_s30 = sld [smem:[#allocation9_spill]]  ;;  %s2485_s14 = sld [smem:[#allocation10_spill]] }
 0xa74   : > { %s2486_s25 = smov %s2006_s26  ;;  %25 = sbr.rel (!%p23_p7) target bundleno = 7 (0x7), region = 119 }
 0xa76   : > { %s2487_s26 = smov %s2480_s21 }
 0xa7b   :  { %1494 = vsyncpa [#allocation3], 1 }
 0xa7c   :  { %1496 = vsyncpa [#allocation3 + $0x1], 1 }

// kernel: tpu_custom_call.1
= control target key start
LH: loop header
LB: loop body
LE: loop exit
PB: predicated region body
PF: predicated region fallthrough
CT: control target
= control target key end

     0   :  { %s2440_s0 = inlined_call_operand.vmem [shape: f32[2,32,32], index: 0, kind: input, shape index: {}]   ;;  %s2441_s1 = inlined_call_operand.vmem [shape: bf16[2,4,8,32], index: 1, kind: input, shape index: {}]   ;;  %s2442_s2 = inlined_call_operand.vmem [shape: bf16[2,4,32,8], index: 2, kind: input, shape index: {}]   ;;  %s2443_s3 = inlined_call_operand.vmem [shape: bf16[32,32], index: 3, kind: input, shape index: {}]   ;;  %s2444_s4 = inlined_call_operand.vmem [shape: bf16[32,32], index: 4, kind: input, shape index: {}]   ;;  %s2445_s5 = inlined_call_operand.vmem [shape: f32[1,32], index: 5, kind: input, shape index: {}]   ;;  %s2446_s6 = inlined_call_operand.vmem [shape: f32[1,32], index: 6, kind: input, shape index: {}]   ;;  %s2447_s7 = inlined_call_operand.vmem [shape: bf16[32,64], index: 7, kind: input, shape index: {}]   ;;  %s2448_s8 = inlined_call_operand.vmem [shape: f32[1,64], index: 8, kind: input, shape index: {}]   ;;  %s2449_s9 = inlined_call_operand.vmem [shape: bf16[64,32], index: 9, kind: input, shape index: {}]   ;;  %s2450_s10 = inlined_call_operand.vmem [shape: f32[1,32], index: 10, kind: input, shape index: {}]   ;;  %s2451_s11 = inlined_call_operand.vmem [shape: f32[1,32], index: 11, kind: input, shape index: {}]   ;;  %s2452_s12 = inlined_call_operand.vmem [shape: f32[1,32], index: 12, kind: input, shape index: {}]   ;;  %s2453_s13 = inlined_call_operand.hbm [shape: f32[2,32,32], index: 13, kind: output, shape index: {}]  }
   0x1   :  { %2461 = sst [smem:[#allocation12_spill]] %s2443_s3 }
   0x2   :  { %18 = vsyncpa [#allocation3], 0 }
   0x3   :  { %20 = vsyncpa [#allocation3 + $0x1], 0  ;;  %s2106_s25 = smov 0   ;;  %s2108_s26 = smov 0  }
   0x4   :  { %s2110_s27 = smov 0   ;;  %s2112_s28 = smov 0  }
   0x5   :  { %s2114_s29 = smov 0   ;;  %s2116_s30 = smov 0  }
   0x6   :  { %s2118_s14 = smov 0   ;;  %s2120_s15 = smov 0  }
   0x7 LB: > { %2462 = sst [smem:[#allocation5_spill]] %s1996_s25  ;;  %s1579_s16 = sadd.s32 4294967295, %s2024_s15   ;;  %s2024_s15 = sphi %s2120_s15, %s26_s15   ;;  %s2020_s14 = sphi %s2118_s14, %s2479_s14   ;;  %s2016_s30 = sphi %s2116_s30, %s2478_s30   ;;  %s2012_s29 = sphi %s2114_s29, %s2477_s29   ;;  %s2008_s28 = sphi %s2112_s28, %s2476_s28   ;;  %s2004_s27 = sphi %s2110_s27, %s2475_s27   ;;  %s2000_s26 = sphi %s2108_s26, %s2481_s26   ;;  %s1996_s25 = sphi %s2106_s25, %s2480_s25  }
   0x8   : > { %2463 = sst [smem:[#allocation6_spill]] %s2004_s27  ;;  %s1580_s17 = sadd.s32 4294967294, %s2024_s15  }
   0x9   : > { %2464 = sst [smem:[#allocation7_spill]] %s2016_s30  ;;  %s35_s18 = sadd.s32 1, %s2016_s30 }
   0xa   : > { %2465 = sst [smem:[#allocation8_spill]] %s2020_s14  ;;  %p36_p0 = scmp.ge.s32.totalorder %s35_s18, 2 }
   0xb   : > { %s38_s19 = sadd.s32 1, %s2020_s14  ;;  %p347_p1 = scmp.ne.s32.totalorder %s2004_s27, %s2000_s26 }
   0xc   : > { %p348_p2 = scmp.eq.s32.totalorder %s1579_s16, 3  ;;  %s2483_s18 = smov (%p36_p0, %s35_s18), 0 }
   0xd   : > { %2466 = sst [smem:[#allocation9_spill]] %s2483_s18  ;;  %s2485_s19 = smov (!%p36_p0, %s38_s19), %s2020_s14 }
   0xe   : > { %s333_s20 = ssub.s32 %s2016_s30, %s2483_s18  ;;  %p2157_p3 = por %p348_p2, %p347_p1 }
   0xf   : > { %p40_p4 = scmp.ge.s32.totalorder %s2485_s19, 2  ;;  %p353_p5 = scmp.ne.s32.totalorder %s2000_s26, %s1996_s25 }
  0x10   : > { %p354_p6 = scmp.eq.s32.totalorder %s1580_s17, 3  ;;  %p1583_p7 = scmp.ge.s32.totalorder %s2024_s15, 1 }
  0x11   : > { %s2487_s19 = smov (%p40_p4, %s2485_s19), 0  ;;  %p431_p9 = scmp.lt.s32.totalorder %s2024_s15, 5 }
  0x12   : > { %2468 = sst [smem:[#allocation10_spill]] %s2487_s19  ;;  %p2166_p8 = por %p354_p6, %p353_p5 }
  0x13   : > { %s332_s23 = ssub.s32 %s2020_s14, %s2487_s19  ;;  %s337_s24 = sadd.s32 1, %s2004_s27 }
  0x14   : > { %s334_s16 = sor.u32 %s333_s20, %s332_s23  ;;  %p432_p10 = pnand %p1583_p7, %p431_p9 }
  0x15   : > { %p335_p11 = scmp.eq.s32.totalorder %s334_s16, 0  ;;  %s2471_s3 = sld [smem:[#allocation12_spill]] (!%p432_p10)  ;;  %v2026_v1 = vmov (!%p432_p10), 0.0   ;;  %vm2027_vm0 = vmmov (!%p432_p10), 0   ;;  %vm530_vm1 = vcmask (!%p432_p10), 261120   ;;  %vm581_vm2 = vcmask (!%p432_p10), 1043456  }
  0x16   : > { %435 = sbr.rel (%p432_p10) target bundleno = 2663 (0xa67), region = 72  ;;  %1685 = vmatprep.subr.bf16.mxu0 (!%p432_p10), %v2026_v1  ;;  %1693 = vmatprep.subr.bf16.mxu1 (!%p432_p10), %v2026_v1  ;;  %s2188_s23 = sshll.u32 (!%p432_p10), %s2008_s28, 1  ;;  %vm577_vm3 = vcmask (!%p432_p10), 64512   ;;  %vm1141_vm4 = vcmask (!%p432_p10), 130048   ;;  %vm1144_vm5 = vcmask (!%p432_p10), 195584   ;;  %vm1364_vm6 = vcmask (!%p432_p10), 523264  }
  0x17   : > { %s2175_s18 = scalar_select %p335_p11, %s2004_s27, %s337_s24  }
  0x18   : > { %1689 = vmatprep.mubr.msk.bf16.mxu0 (!%p432_p10), %vm2027_vm0, %v2026_v1  ;;  %p490_p12 = scmp.lt.s32.totalorder (!%p432_p10), %s2012_s29, 1  ;;  %p492_p13 = scmp.lt.s32.totalorder (!%p432_p10), %s2188_s23, 3  ;;  %1695 = vmatprep.mubr.msk.bf16.mxu1 (!%p432_p10), %vm2027_vm0, %v2026_v1 }
  0x19   : > { %2470 = sst [smem:[#allocation11_spill]] %s2175_s18  ;;  %s2029_s14 = smov (!%p432_p10), 112  }
  0x1a   : > { %s2030_s18 = smov (!%p432_p10), 104  }
  0x1b   : > { %v1872_v0 = vld [vmem:[%s2471_s3] sm:$0xff] (!%p432_p10)   ;;  %v1873_v2 = vld [vmem:[%s2471_s3 + $0x8] sm:$0xff] (!%p432_p10)  }
  0x1c   : > { %1686 = vmatpush3.bf16.msra.mxu0 (!%p432_p10), %v1872_v0 }
  0x1d   : > { %1687 = vmatprep.subr.bf16.mxu0 %v2026_v1  ;;  %s491_s25 = scalar_select %p490_p12, %s2012_s29, 1 }
  0x1e   : > { %s493_s30 = scalar_select %p492_p13, %s2188_s23, 3 }
  0x1f   : > { %s1586_s24 = sshll.u32 %s491_s25, 2  ;;  %s1650_s16 = sshll.u32 %s491_s25, 6 }
  0x20   : > { %1688 = vmatpush3.bf16.msra.mxu0 %v1873_v2  ;;  %s495_s17 = sadd.s32 %s1586_s24, %s493_s30  ;;  %s2200_s28 = scalar_lea.vmem %s2442_s2, %s1650_s16 }
  0x21   : > { %1721 = vmatprep.subr.bf16.mxu0 %v2026_v1  ;;  %s1587_s19 = sshll.u32 %s495_s17, 3  ;;  %s1649_s3 = sshll.u32 %s491_s25, 4  ;;  %v1874_v25 = vld [vmem:[%s2200_s28] sm:$0xff]   ;;  %v1875_v26 = vld [vmem:[%s2200_s28 + $0x8] sm:$0xff]   ;;  %v1876_v61 = vld [vmem:[%s2200_s28 + $0x10] sm:$0xff]  }
  0x22   : > { %s497_s27 = scalar_lea.vmem %s2440_s0, %s1587_s19  ;;  %s2218_s16 = scalar_lea.vmem %s2441_s1, %s1649_s3  ;;  %v1877_v62 = vld [vmem:[%s2200_s28 + $0x18] sm:$0xff]  }
  0x23   : > { %v2206_v3 = vld [vmem:[%s497_s27] sm:$0xff]  ;;  %v2208_v4 = vld [vmem:[%s497_s27 + $0x8] sm:$0xff]  ;;  %s2028_s27 = smov 120   ;;  %s2460_s17 = smov 8  }
  0x24   : > { %v513_v5 = vpack.c.bf16 %v2208_v4, %v2206_v3  ;;  %v576_v6 = vld [vmem:[%s2218_s16] sm:$0xf]  ;;  %v1608_v8 = vld [vmem:[%s2218_s16 + $0x8] sm:$0xf]  ;;  %v1617_v23 = vld [vmem:[%s2218_s16 + $0xc] sm:$0xf] }
  0x25   : > { %v583_v7 = vsel %vm581_vm2, %v576_v6, 0  ;;  %v853_v9 = vsel %vm581_vm2, %v1608_v8, 0  ;;  %v988_v24 = vsel %vm581_vm2, %v1617_v23, 0  ;;  %v1599_v38 = vld [vmem:[%s2218_s16 + $0x4] sm:$0xf]  ;;  %s2032_s3 = smov 16  }
  0x26   : > { %1690 = vmatmul.mubr.msk.bf16.vlgmr.msra.gmra.mrb[0].mxu0 %vm530_vm1, %v513_v5  ;;  %1694 = vmatpush3.bf16.msra.mxu1 %v583_v7  ;;  %v718_v42 = vsel %vm581_vm2, %v1599_v38, 0  ;;  %s2033_s30 = smov 24  }
  0x27   : > { %1723 = vmatprep.mubr.msk.bf16.mxu0 %vm2027_vm0, %v2026_v1  ;;  %1699 = vmatprep.subr.bf16.mxu1 %v2026_v1 }
  0x28   : > { %1722 = vmatpush3.bf16.msra.mxu0 %v853_v9 }
  0x29   : > { %1735 = vmatprep.subr.bf16.mxu0 %v2026_v1 }
  0xf9   : > { %v568_v10 = vpop.f32.mrb[0].mxu0 }
  0xfa   : > { %v1691_v11 = vpop.f32.mrb[1].mxu0 }
  0xfb   : > { %v571_v12 = vpop.f32.mrb[2].mxu0 }
  0xfc   : > { %v575_v13 = vpack.c.bf16 %v571_v12, %v568_v10  ;;  %v1692_v14 = vpop.f32.mrb[3].mxu0 }
  0xfe   : > { %712 = vrot.lane.b32.xlu1 %v575_v13, %s2028_s27  ;;  %1696 = vmatmul.mubr.msk.bf16.vlgmr.msra.gmra.mrb[0].mxu1 %vm577_vm3, %v575_v13 }
  0xff   : > { %1703 = vmatprep.mubr.msk.bf16.mxu1 %vm2027_vm0, %v2026_v1  ;;  %1700 = vmatpush3.bf16.msra.mxu1 %v1874_v25 }
 0x100   : > { %1701 = vmatprep.subr.bf16.mxu1 %v2026_v1 }
 0x102   : > { %847 = vrot.lane.b32.xlu1 %v575_v13, %s2029_s14 }
 0x103   : > { %1702 = vmatpush3.bf16.msra.mxu1 %v1875_v26  ;;  %v1879_v26 = vld [vmem:[%s2200_s28 + $0x28] sm:$0xff]  }
 0x104   : > { %1707 = vmatprep.subr.bf16.mxu1 %v2026_v1 }
 0x170   : > { %v713_v15 = vpop.permute.xlu1 %712 }
 0x174   : > { %v848_v16 = vpop.permute.xlu1 %847 }
 0x175   : > { %1724 = vmatmul.mubr.msk.bf16.vlgmr.msra.gmra.mrb[4].mxu0 %vm577_vm3, %v848_v16 }
 0x176   : > { %1737 = vmatprep.mubr.msk.bf16.mxu0 %vm2027_vm0, %v2026_v1  ;;  %1736 = vmatpush3.bf16.msra.mxu0 %v988_v24 }
 0x177   : > { %1749 = vmatprep.subr.bf16.mxu0 %v2026_v1 }
 0x1d1   : > { %v619_v17 = vpop.f32.mrb[0].mxu1 }
 0x1d2   : > { %v1697_v18 = vpop.f32.mrb[1].mxu1  ;;  %v626_v19 = vsel %vm530_vm1, %v619_v17, -inf }
 0x1d3   : > { %627 = vmax.xlane.f32.xlu0 %v626_v19  ;;  %v622_v20 = vpop.f32.mrb[2].mxu1 }
 0x1d4   : > { %v1698_v21 = vpop.f32.mrb[3].mxu1  ;;  %v629_v22 = vsel %vm530_vm1, %v622_v20, -inf }
 0x1d5   : > { %v1878_v21 = vld [vmem:[%s2200_s28 + $0x20] sm:$0xff]  }
 0x1d7   : > { %630 = vmax.xlane.f32.xlu0 %v629_v22 }
 0x1ed   : > { %982 = vrot.lane.b32.xlu0 %v575_v13, %s2030_s18 }
 0x248   : > { %v2241_v27 = vpop.f32.mrb[4].mxu0 }
 0x249   : > { %v1725_v28 = vpop.f32.mrb[5].mxu0  ;;  %v896_v57 = vsel %vm530_vm1, %v2241_v27, -inf }
 0x24a   : > { %v2243_v29 = vpop.f32.mrb[6].mxu0 }
 0x24b   : > { %v1726_v30 = vpop.f32.mrb[7].mxu0  ;;  %v899_v58 = vsel %vm530_vm1, %v2243_v29, -inf }
 0x260   : > { %v628_v31 = vpop.xlane.xlu0 %627 }
 0x261   : > { %v632_v32 = vsub.f32 %v619_v17, %v628_v31  ;;  %v1880_v31 = vld [vmem:[%s2200_s28 + $0x30] sm:$0xff]  }
 0x263   : > { %v634_v33 = vmul.f32 1.442695, %v632_v32 }
 0x264   : > { %v631_v34 = vpop.xlane.xlu0 %630 }
 0x265   : > { %v633_v35 = vsub.f32 %v622_v20, %v631_v34  ;;  %1890 = vpow2.f32 %v634_v33 }
 0x267   : > { %v636_v36 = vmul.f32 1.442695, %v633_v35  ;;  %v1881_v35 = vld [vmem:[%s2200_s28 + $0x38] sm:$0xff]  }
 0x268   : > { %v983_v37 = vpop.permute.xlu0 %982 }
 0x269   : > { %1892 = vpow2.f32 %v636_v36  ;;  %1738 = vmatmul.mubr.msk.bf16.vlgmr.msra.gmra.mrb[8].mxu0 %vm577_vm3, %v983_v37 }
 0x26a   : > { %1753 = vmatprep.mubr.msk.bf16.mxu0 %vm2027_vm0, %v2026_v1 }
 0x26f   : > { %v2249_v39 = vpop.eup %1890 }
 0x273   : > { %v2251_v40 = vpop.eup %1892 }
 0x274   : > { %v644_v41 = vpack.c.bf16 %v2251_v40, %v2249_v39 }
 0x276   : > { %1704 = vmatmul.mubr.msk.bf16.vlgmr.msra.gmra.mrb[4].mxu1 %vm530_vm1, %v644_v41  ;;  %v638_v41 = vsel %vm530_vm1, %v2249_v39, 0.0 }
 0x277   : > { %1708 = vmatpush3.bf16.msra.mxu1 %v718_v42  ;;  %1709 = vmatprep.mubr.msk.bf16.mxu1 %vm2027_vm0, %v2026_v1  ;;  %v641_v42 = vsel %vm530_vm1, %v2251_v40, 0.0 }
 0x278   : > { %1713 = vmatprep.subr.bf16.mxu1 %v2026_v1 }
 0x27e   : > { %1710 = vmatmul.mubr.msk.bf16.vlgmr.msra.gmra.mrb[8].mxu1 %vm577_vm3, %v713_v15 }
 0x27f   : > { %1717 = vmatprep.mubr.msk.bf16.mxu1 %vm2027_vm0, %v2026_v1  ;;  %1714 = vmatpush3.bf16.msra.mxu1 %v1876_v61 }
 0x280   : > { %1715 = vmatprep.subr.bf16.mxu1 %v2026_v1 }
 0x283   : > { %1716 = vmatpush3.bf16.msra.mxu1 %v1877_v62 }
 0x284   : > { %1727 = vmatprep.subr.bf16.mxu1 %v2026_v1 }
 0x33c   : > { %v1024_v43 = vpop.f32.mrb[8].mxu0 }
 0x33d   : > { %v1739_v44 = vpop.f32.mrb[9].mxu0  ;;  %v1031_v59 = vsel %vm530_vm1, %v1024_v43, -inf }
 0x33e   : > { %v1027_v45 = vpop.f32.mrb[10].mxu0 }
 0x33f   : > { %v1740_v46 = vpop.f32.mrb[11].mxu0  ;;  %v1034_v60 = vsel %vm530_vm1, %v1027_v45, -inf }
 0x349   : > { %v2263_v47 = vpop.f32.mrb[4].mxu1 }
 0x34a   : > { %v1705_v48 = vpop.f32.mrb[5].mxu1 }
 0x34b   : > { %v2265_v49 = vpop.f32.mrb[6].mxu1 }
 0x34c   : > { %v1706_v50 = vpop.f32.mrb[7].mxu1 }
 0x351   : > { %v754_v51 = vpop.f32.mrb[8].mxu1 }
 0x352   : > { %v1711_v52 = vpop.f32.mrb[9].mxu1  ;;  %v761_v53 = vsel %vm530_vm1, %v754_v51, -inf }
 0x353   : > { %762 = vmax.xlane.f32.xlu1 %v761_v53  ;;  %v757_v54 = vpop.f32.mrb[10].mxu1 }
 0x354   : > { %v1712_v55 = vpop.f32.mrb[11].mxu1  ;;  %v764_v56 = vsel %vm530_vm1, %v757_v54, -inf }
 0x355   : > { %765 = vmax.xlane.f32.xlu0 %v764_v56  ;;  %v1882_v56 = vld [vmem:[%s2444_s4] sm:$0xff]  }
 0x356   : > { %1750 = vmatpush3.bf16.msra.mxu0 %v1882_v56  ;;  %v1885_v56 = vld [vmem:[%s2447_s7 + $0x8] sm:$0xff]  }
 0x357   : > { %897 = vmax.xlane.f32.xlu1 %v896_v57  ;;  %1751 = vmatprep.subr.bf16.mxu0 %v2026_v1 }
 0x35b   : > { %900 = vmax.xlane.f32.xlu1 %v899_v58 }
 0x35f   : > { %1032 = vmax.xlane.f32.xlu1 %v1031_v59 }
 0x363   : > { %1035 = vmax.xlane.f32.xlu1 %v1034_v60 }
 0x3e0   : > { %v763_v63 = vpop.xlane.xlu1 %762 }
 0x3e1   : > { %v767_v0 = vsub.f32 %v754_v51, %v763_v63 }
 0x3e2   : > { %v766_v2 = vpop.xlane.xlu0 %765 }
 0x3e3   : > { %v769_v5 = vmul.f32 1.442695, %v767_v0  ;;  %v768_v6 = vsub.f32 %v757_v54, %v766_v2 }
 0x3e4   : > { %v898_v7 = vpop.xlane.xlu1 %897 }
 0x3e5   : > { %v771_v8 = vmul.f32 1.442695, %v768_v6  ;;  %v902_v9 = vsub.f32 %v2241_v27, %v898_v7  ;;  %1894 = vpow2.f32 %v769_v5  ;;  %v1883_v6 = vld [vmem:[%s2444_s4 + $0x8] sm:$0xff]  }
 0x3e6   : > { %1752 = vmatpush3.bf16.msra.mxu0 %v1883_v6 }
 0x3e7   : > { %1896 = vpow2.f32 %v771_v8  ;;  %v904_v10 = vmul.f32 1.442695, %v902_v9  ;;  %1765 = vmatprep.subr.bf16.mxu0 %v2026_v1 }
 0x3e8   : > { %v901_v11 = vpop.xlane.xlu1 %900 }
 0x3e9   : > { %1898 = vpow2.f32 %v904_v10  ;;  %v903_v12 = vsub.f32 %v2243_v29, %v901_v11 }
 0x3eb   : > { %v906_v13 = vmul.f32 1.442695, %v903_v12 }
 0x3ec   : > { %v1033_v14 = vpop.xlane.xlu1 %1032 }
 0x3ed   : > { %1900 = vpow2.f32 %v906_v13  ;;  %v1037_v15 = vsub.f32 %v1024_v43, %v1033_v14 }
 0x3ef   : > { %v1039_v16 = vmul.f32 1.442695, %v1037_v15  ;;  %v1895_v17 = vpop.eup %1894 }
 0x3f0   : > { %v1036_v18 = vpop.xlane.xlu1 %1035  ;;  %v773_v30 = vsel %vm530_vm1, %v1895_v17, 0.0 }
 0x3f1   : > { %v1897_v19 = vpop.eup %1896  ;;  %1902 = vpow2.f32 %v1039_v16  ;;  %v1038_v20 = vsub.f32 %v1027_v45, %v1036_v18 }
 0x3f2   : > { %v779_v22 = vpack.c.bf16 %v1897_v19, %v1895_v17  ;;  %v776_v33 = vsel %vm530_vm1, %v1897_v19, 0.0 }
 0x3f3   : > { %v1899_v23 = vpop.eup %1898  ;;  %v1041_v24 = vmul.f32 1.442695, %v1038_v20 }
 0x3f4   : > { %1718 = vmatmul.mubr.msk.bf16.vlgmr.msra.gmra.mrb[12].mxu1 %vm530_vm1, %v779_v22  ;;  %v908_v25 = vsel %vm530_vm1, %v1899_v23, 0.0 }
 0x3f5   : > { %1904 = vpow2.f32 %v1041_v24  ;;  %1728 = vmatpush3.bf16.msra.mxu1 %v1878_v21  ;;  %909 = vadd.xlane.f32.xlu1 %v908_v25 }
 0x3f6   : > { %1729 = vmatprep.subr.bf16.mxu1 %v2026_v1  ;;  %1731 = vmatprep.mubr.msk.bf16.mxu1 %vm2027_vm0, %v2026_v1 }
 0x3f7   : > { %v1901_v27 = vpop.eup %1900 }
 0x3f8   : > { %v911_v28 = vsel %vm530_vm1, %v1901_v27, 0.0  ;;  %v914_v29 = vpack.c.bf16 %v1901_v27, %v1899_v23 }
 0x3f9   : > { %1730 = vmatpush3.bf16.msra.mxu1 %v1879_v26  ;;  %912 = vadd.xlane.f32.xlu0 %v911_v28 }
 0x3fa   : > { %774 = vadd.xlane.f32.xlu1 %v773_v30  ;;  %1741 = vmatprep.subr.bf16.mxu1 %v2026_v1 }
 0x3fb   : > { %v1903_v32 = vpop.eup %1902 }
 0x3fc   : > { %1732 = vmatmul.mubr.msk.bf16.vlgmr.msra.gmra.mrb[16].mxu1 %vm530_vm1, %v914_v29  ;;  %v1043_v34 = vsel %vm530_vm1, %v1903_v32, 0.0 }
 0x3fd   : > { %1742 = vmatpush3.bf16.msra.mxu1 %v1880_v31  ;;  %777 = vadd.xlane.f32.xlu0 %v776_v33 }
 0x3fe   : > { %1044 = vadd.xlane.f32.xlu1 %v1043_v34  ;;  %1743 = vmatprep.subr.bf16.mxu1 %v2026_v1 }
 0x3ff   : > { %v1905_v36 = vpop.eup %1904  ;;  %1745 = vmatprep.mubr.msk.bf16.mxu1 %vm2027_vm0, %v2026_v1 }
 0x400   : > { %v1046_v37 = vsel %vm530_vm1, %v1905_v36, 0.0  ;;  %v1049_v38 = vpack.c.bf16 %v1905_v36, %v1903_v32 }
 0x401   : > { %1744 = vmatpush3.bf16.msra.mxu1 %v1881_v35  ;;  %1047 = vadd.xlane.f32.xlu0 %v1046_v37 }
 0x402   : > { %639 = vadd.xlane.f32.xlu1 %v638_v41  ;;  %1757 = vmatprep.subr.bf16.mxu1 %v2026_v1 }
 0x404   : > { %1746 = vmatmul.mubr.msk.bf16.vlgmr.msra.gmra.mrb[20].mxu1 %vm530_vm1, %v1049_v38 }
 0x405   : > { %642 = vadd.xlane.f32.xlu0 %v641_v42  ;;  %1761 = vmatprep.mubr.msk.bf16.mxu1 %vm2027_vm0, %v2026_v1 }
 0x482   : > { %v910_v43 = vpop.xlane.xlu1 %909 }
 0x486   : > { %v913_v44 = vpop.xlane.xlu0 %912 }
 0x487   : > { %v775_v45 = vpop.xlane.xlu1 %774 }
 0x488   : > { %1906 = vrcp.f32 %v775_v45 }
 0x48a   : > { %v778_v46 = vpop.xlane.xlu0 %777 }
 0x48b   : > { %1908 = vrcp.f32 %v778_v46  ;;  %v1045_v55 = vpop.xlane.xlu1 %1044 }
 0x48c   : > { %1910 = vrcp.f32 %v910_v43 }
 0x48d   : > { %1912 = vrcp.f32 %v913_v44 }
 0x48e   : > { %v1048_v57 = vpop.xlane.xlu0 %1047  ;;  %1914 = vrcp.f32 %v1045_v55  ;;  %v1884_v55 = vld [vmem:[%s2447_s7] sm:$0xff]  }
 0x48f   : > { %1916 = vrcp.f32 %v1048_v57  ;;  %v640_v17 = vpop.xlane.xlu1 %639  ;;  %1758 = vmatpush3.bf16.msra.mxu1 %v1884_v55  ;;  %v1886_v57 = vld [vmem:[%s2449_s9] sm:$0xff]  }
 0x490   : > { %1918 = vrcp.f32 %v640_v17  ;;  %1759 = vmatprep.subr.bf16.mxu1 %v2026_v1  ;;  %v1631_v17 = vld [vmem:[%s2448_s8] ss:$0 sm:$0xff] }
 0x491   : > { %v1642_v55 = vld [vmem:[%s2452_s12] ss:$0 sm:$0xff] }
 0x492   : > { %v1907_v48 = vpop.eup %1906  ;;  %v643_v18 = vpop.xlane.xlu0 %642 }
 0x493   : > { %1920 = vrcp.f32 %v643_v18  ;;  %1760 = vmatpush3.bf16.msra.mxu1 %v1885_v56 }
 0x495   : > { %v1909_v51 = vpop.eup %1908 }
 0x496   : > { %v1911_v60 = vpop.eup %1910 }
 0x497   : > { %v1913_v62 = vpop.eup %1912 }
 0x498   : > { %v1915_v9 = vpop.eup %1914 }
 0x499   : > { %v1917_v11 = vpop.eup %1916 }
 0x49a   : > { %v1919_v20 = vpop.eup %1918 }
 0x49b   : > { %v707_v27 = vmul.f32 %v1919_v20, %v2263_v47 }
 0x49d   : > { %v1921_v22 = vpop.eup %1920 }
 0x49e   : > { %v708_v28 = vmul.f32 %v1921_v22, %v2265_v49 }
 0x4c7   : > { %v834_v39 = vpop.f32.mrb[12].mxu1 }
 0x4c8   : > { %v1719_v50 = vpop.f32.mrb[13].mxu1  ;;  %v843_v53 = vmul.f32 %v1907_v48, %v834_v39 }
 0x4c9   : > { %v837_v52 = vpop.f32.mrb[14].mxu1 }
 0x4ca   : > { %v844_v54 = vmul.f32 %v1909_v51, %v837_v52  ;;  %v1720_v40 = vpop.f32.mrb[15].mxu1 }
 0x4cc   : > { %v1857_v58 = vpack.i.bf16 %v844_v54, %v843_v53 }
 0x4ce   : > { %1858 = vrot.lane.b32.xlu1 %v1857_v58, %s2460_s17  ;;  %v1887_v58 = vld [vmem:[%s2449_s9 + $0x8] sm:$0xff]   ;;  %s2034_s17 = smov [#allocation2]  }
 0x4cf   : > { %v969_v59 = vpop.f32.mrb[16].mxu1 }
 0x4d0   : > { %v1733_v61 = vpop.f32.mrb[17].mxu1  ;;  %v978_v0 = vmul.f32 %v1911_v60, %v969_v59 }
 0x4d1   : > { %v972_v63 = vpop.f32.mrb[18].mxu1 }
 0x4d2   : > { %v979_v2 = vmul.f32 %v1913_v62, %v972_v63  ;;  %v1734_v5 = vpop.f32.mrb[19].mxu1 }
 0x4d3   : > { %v1629_v5 = vld [vmem:[%s2445_s5] ss:$0 sm:$0xff] }
 0x4d4   : > { %v1862_v7 = vpack.i.bf16 %v979_v2, %v978_v0 }
 0x4d6   : > { %1863 = vrot.lane.b32.xlu0 %v1862_v7, %s2032_s3  ;;  %s486_s3 = sand.u32 1, %s2000_s26  }
 0x4d7   : > { %v1104_v8 = vpop.f32.mrb[20].mxu1  ;;  %s1584_s24 = sshll.u32 %s486_s3, 4 }
 0x4d8   : > { %v1747_v10 = vpop.f32.mrb[21].mxu1  ;;  %v1113_v13 = vmul.f32 %v1915_v9, %v1104_v8  ;;  %s488_s20 = scalar_lea.vmem [#allocation2], %s1584_s24  ;;  %s1934_s24 = sshll.u32 %s2034_s17, 4  ;;  %s1935_s24 = int_to_ptr.vmem [resolvable:$false] %s1934_s24 }
 0x4d9   : > { %v1107_v12 = vpop.f32.mrb[22].mxu1  ;;  %v1630_v10 = vld [vmem:[%s2446_s6] ss:$0 sm:$0xff]  ;;  %s1473_s28 = sshll.u32 %s488_s20, 4  ;;  %s1936_s27 = scalar_lea.vmem %s1935_s24, 512  ;;  %s2384_s28 = int_to_ptr.vmem [resolvable:$true] %s1473_s28 }
 0x4da   : > { %v1114_v14 = vmul.f32 %v1917_v11, %v1107_v12  ;;  %v1748_v15 = vpop.f32.mrb[23].mxu1  ;;  %p1937_p4 = scmp.lt.s32.totalorder %s2384_s28, %s1935_s24 }
 0x4db   : > { %v1888_v15 = vld [vmem:[%s2449_s9 + $0x10] sm:$0xff]  }
 0x4dc   : > { %v1867_v16 = vpack.i.bf16 %v1114_v14, %v1113_v13 }
 0x4de   : > { %1868 = vrot.lane.b32.xlu1 %v1867_v16, %s2033_s30  ;;  %v1889_v16 = vld [vmem:[%s2449_s9 + $0x18] sm:$0xff]   ;;  %s1645_s30 = sshll.u32 %s2012_s29, 2 }
 0x4df   : > { %s1470_s14 = sadd.s32 %s1645_s30, %s2188_s23  ;;  %s2387_s23 = scalar_lea.sflag [#allocation3], %s486_s3 }
 0x4e0   : > { %s1646_s25 = sshll.u32 %s1470_s14, 7  ;;  %s1930_s30 = scalar_lea.vmem %s2384_s28, 256 }
 0x4e1   : > { %s2381_s16 = scalar_lea.hbm %s2453_s13, %s1646_s25  ;;  %p1931_p0 = scmp.ne.s32.totalorder %s2384_s28, %s1930_s30 }
 0x4e2   : > { %p1938_p5 = scmp.lt.s32.totalorder %s1936_s27, %s1930_s30 }
 0x4e3   : > { %p1932_p1 = pnand %p1931_p0, %p2157_p3 }
 0x4e4   : > { %p1939_p6 = por %p1938_p5, %p1937_p4 }
 0x4e5   : > { %p1933_p2 = pneg %p1932_p1 }
 0x4e7   : > { %p1940_p7 = pnand %p1939_p6, %p1933_p2 }
 0x540   : > { %v1859_v19 = vpop.permute.xlu1 %1858 }
 0x541   : > { %v1861_v23 = vunpack.i.h.bf16 %v1859_v19  ;;  %v1860_v24 = vunpack.i.l.bf16 %v1859_v19 }
 0x543   : > { %v1140_v30 = vsel %vm577_vm3, %v708_v28, %v1861_v23  ;;  %v1139_v31 = vsel %vm577_vm3, %v707_v27, %v1860_v24 }
 0x548   : > { %v1864_v21 = vpop.permute.xlu0 %1863 }
 0x549   : > { %v1866_v25 = vunpack.i.h.bf16 %v1864_v21  ;;  %v1865_v26 = vunpack.i.l.bf16 %v1864_v21 }
 0x54b   : > { %v1142_v34 = vsel %vm1141_vm4, %v1139_v31, %v1865_v26  ;;  %v1143_v35 = vsel %vm1141_vm4, %v1140_v30, %v1866_v25 }
 0x550   : > { %v1869_v29 = vpop.permute.xlu1 %1868 }
 0x551   : > { %v1871_v32 = vunpack.i.h.bf16 %v1869_v29  ;;  %v1870_v33 = vunpack.i.l.bf16 %v1869_v29 }
 0x553   : > { %v1145_v36 = vsel %vm1144_vm5, %v1142_v34, %v1870_v33  ;;  %v1146_v37 = vsel %vm1144_vm5, %v1143_v35, %v1871_v32 }
 0x554   : > { %v1147_v38 = vpack.c.bf16 %v1146_v37, %v1145_v36 }
 0x556   : > { %1754 = vmatmul.mubr.msk.bf16.vlgmr.msra.gmra.mrb[12].mxu0 %vm530_vm1, %v1147_v38 }
 0x557   : > { %1773 = vmatprep.mubr.msk.bf16.mxu0 %vm2027_vm0, %v2026_v1  ;;  %1766 = vmatpush3.bf16.msra.mxu0 %v1886_v57 }
 0x558   : > { %1767 = vmatprep.subr.bf16.mxu0 %v2026_v1 }
 0x55b   : > { %1768 = vmatpush3.bf16.msra.mxu0 %v1887_v58 }
 0x55c   : > { %1769 = vmatprep.subr.bf16.mxu0 %v2026_v1 }
 0x55f   : > { %1770 = vmatpush3.bf16.msra.mxu0 %v1888_v15 }
 0x560   : > { %1771 = vmatprep.subr.bf16.mxu0 %v2026_v1  ;;  %v1635_v1 = vld [vmem:[%s2450_s10] ss:$0 sm:$0xff] }
 0x563   : > { %1772 = vmatpush3.bf16.msra.mxu0 %v1889_v16 }
 0x629   : > { %v1201_v47 = vpop.f32.mrb[12].mxu0 }
 0x62a   : > { %v1208_v49 = vadd.f32 %v1201_v47, %v2206_v3  ;;  %v1755_v41 = vpop.f32.mrb[13].mxu0 }
 0x62b   : > { %v1204_v42 = vpop.f32.mrb[14].mxu0 }
 0x62c   : > { %v1209_v43 = vadd.f32 %v1204_v42, %v2208_v4  ;;  %v1756_v44 = vpop.f32.mrb[15].mxu0  ;;  %v1212_v45 = vsel %vm530_vm1, %v1208_v49, 0.0 }
 0x62d   : > { %1213 = vadd.xlane.f32.xlu1 %v1212_v45 }
 0x62e   : > { %v1215_v46 = vsel %vm530_vm1, %v1209_v43, 0.0 }
 0x62f   : > { %1216 = vadd.xlane.f32.xlu0 %v1215_v46 }
 0x6ba   : > { %v1214_v39 = vpop.xlane.xlu1 %1213 }
 0x6bb   : > { %v1218_v48 = vmul.f32 0.03125, %v1214_v39 }
 0x6bc   : > { %v1217_v50 = vpop.xlane.xlu0 %1216 }
 0x6bd   : > { %v1220_v51 = vsub.f32 %v1208_v49, %v1218_v48  ;;  %v1219_v52 = vmul.f32 0.03125, %v1217_v50 }
 0x6bf   : > { %v1221_v53 = vsub.f32 %v1209_v43, %v1219_v52  ;;  %v1222_v54 = vmul.f32 %v1220_v51, %v1220_v51 }
 0x6c1   : > { %v1224_v3 = vsel %vm530_vm1, %v1222_v54, 0.0  ;;  %v1223_v40 = vmul.f32 %v1221_v53, %v1221_v53 }
 0x6c2   : > { %1225 = vadd.xlane.f32.xlu0 %v1224_v3  ;;  %v1641_v3 = vld [vmem:[%s2451_s11] ss:$0 sm:$0xff] }
 0x6c3   : > { %v1227_v4 = vsel %vm530_vm1, %v1223_v40, 0.0 }
 0x6c4   : > { %1228 = vadd.xlane.f32.xlu1 %v1227_v4 }
 0x74f   : > { %v1226_v59 = vpop.xlane.xlu0 %1225 }
 0x750   : > { %v1230_v60 = vmul.f32 0.03125, %v1226_v59 }
 0x751   : > { %v1229_v61 = vpop.xlane.xlu1 %1228 }
 0x752   : > { %v1232_v62 = vadd.f32 1e-05, %v1230_v60  ;;  %v1231_v63 = vmul.f32 0.03125, %v1229_v61 }
 0x754   : > { %1922 = vrsqrt.f32 %v1232_v62  ;;  %v1233_v0 = vadd.f32 1e-05, %v1231_v63 }
 0x756   : > { %1924 = vrsqrt.f32 %v1233_v0 }
 0x75e   : > { %v1923_v2 = vpop.eup %1922 }
 0x75f   : > { %v1236_v6 = vmul.f32 %v1923_v2, %v1220_v51 }
 0x760   : > { %v1925_v7 = vpop.eup %1924 }
 0x761   : > { %v1244_v8 = vmul.f32 %v1629_v5, %v1236_v6  ;;  %v1237_v9 = vmul.f32 %v1925_v7, %v1221_v53 }
 0x763   : > { %v1245_v11 = vmul.f32 %v1629_v5, %v1237_v9  ;;  %v1252_v12 = vadd.f32 %v1630_v10, %v1244_v8 }
 0x765   : > { %v1253_v13 = vadd.f32 %v1630_v10, %v1245_v11 }
 0x767   : > { %v1254_v14 = vpack.c.bf16 %v1253_v13, %v1252_v12 }
 0x769   : > { %1762 = vmatmul.mubr.msk.bf16.vlgmr.msra.gmra.mrb[24].mxu1 %vm530_vm1, %v1254_v14 }
 0x83c   : > { %v1315_v18 = vpop.f32.mrb[24].mxu1 }
 0x83d   : > { %v1316_v19 = vadd.f32 %v1631_v17, %v1315_v18  ;;  %v1763_v20 = vpop.f32.mrb[25].mxu1 }
 0x83e   : > { %v1318_v21 = vpop.f32.mrb[26].mxu1 }
 0x83f   : > { %v1319_v22 = vadd.f32 %v1631_v17, %v1318_v21  ;;  %v1764_v23 = vpop.f32.mrb[27].mxu1  ;;  %v1322_v24 = vmax.f32 %v1316_v19, 0.0 }
 0x841   : > { %v1323_v25 = vmax.f32 %v1319_v22, 0.0 }
 0x843   : > { %v1324_v26 = vpack.c.bf16 %v1323_v25, %v1322_v24 }
 0x845   : > { %1774 = vmatmul.mubr.msk.bf16.vlgmr.msra.gmra.mrb[16].mxu0 %vm1364_vm6, %v1324_v26 }
 0x918   : > { %v1402_v27 = vpop.f32.mrb[16].mxu0 }
 0x919   : > { %v1403_v28 = vadd.f32 %v1635_v1, %v1402_v27  ;;  %v1775_v29 = vpop.f32.mrb[17].mxu0 }
 0x91a   : > { %v1405_v30 = vpop.f32.mrb[18].mxu0 }
 0x91b   : > { %v1406_v31 = vadd.f32 %v1635_v1, %v1405_v30  ;;  %v1776_v32 = vpop.f32.mrb[19].mxu0  ;;  %v1409_v33 = vadd.f32 %v1403_v28, %v1252_v12 }
 0x91d   : > { %v1413_v34 = vsel %vm530_vm1, %v1409_v33, 0.0  ;;  %v1410_v35 = vadd.f32 %v1406_v31, %v1253_v13 }
 0x91e   : > { %1414 = vadd.xlane.f32.xlu0 %v1413_v34 }
 0x91f   : > { %v1416_v36 = vsel %vm530_vm1, %v1410_v35, 0.0 }
 0x920   : > { %1417 = vadd.xlane.f32.xlu1 %v1416_v36 }
 0x9ab   : > { %v1415_v37 = vpop.xlane.xlu0 %1414 }
 0x9ac   : > { %v1419_v38 = vmul.f32 0.03125, %v1415_v37 }
 0x9ad   : > { %v1418_v47 = vpop.xlane.xlu1 %1417 }
 0x9ae   : > { %v1421_v49 = vsub.f32 %v1409_v33, %v1419_v38  ;;  %v1420_v41 = vmul.f32 0.03125, %v1418_v47 }
 0x9b0   : > { %v1422_v42 = vsub.f32 %v1410_v35, %v1420_v41  ;;  %v1423_v43 = vmul.f32 %v1421_v49, %v1421_v49 }
 0x9b2   : > { %v1425_v44 = vsel %vm530_vm1, %v1423_v43, 0.0  ;;  %v1424_v45 = vmul.f32 %v1422_v42, %v1422_v42 }
 0x9b3   : > { %1426 = vadd.xlane.f32.xlu0 %v1425_v44 }
 0x9b4   : > { %v1428_v46 = vsel %vm530_vm1, %v1424_v45, 0.0 }
 0x9b5   : > { %1429 = vadd.xlane.f32.xlu1 %v1428_v46 }
 0xa40   : > { %v1427_v39 = vpop.xlane.xlu0 %1426 }
 0xa41   : > { %v1431_v48 = vmul.f32 0.03125, %v1427_v39 }
 0xa42   : > { %v1430_v50 = vpop.xlane.xlu1 %1429 }
 0xa43   : > { %v1433_v51 = vadd.f32 1e-05, %v1431_v48  ;;  %v1432_v52 = vmul.f32 0.03125, %v1430_v50 }
 0xa45   : > { %1926 = vrsqrt.f32 %v1433_v51  ;;  %v1434_v53 = vadd.f32 1e-05, %v1432_v52 }
 0xa47   : > { %1928 = vrsqrt.f32 %v1434_v53 }
 0xa4f   : > { %v1927_v54 = vpop.eup %1926 }
 0xa50   : > { %v1437_v40 = vmul.f32 %v1927_v54, %v1421_v49 }
 0xa51   : > { %v1929_v4 = vpop.eup %1928 }
 0xa52   : > { %v1445_v56 = vmul.f32 %v1641_v3, %v1437_v40  ;;  %v1438_v57 = vmul.f32 %v1929_v4, %v1422_v42 }
 0xa54   : > { %v1453_v58 = vadd.f32 %v1642_v55, %v1445_v56  ;;  %v1446_v59 = vmul.f32 %v1641_v3, %v1438_v57 }
 0xa56   : > { %v1454_v60 = vadd.f32 %v1642_v55, %v1446_v59  ;;  %1455 = vst.msk [vmem:[%s488_s20] sm:$0xff] %vm530_vm1, %v1453_v58 }
 0xa58   : > { %1456 = vst.msk [vmem:[%s488_s20 + $0x8] sm:$0xff] %vm530_vm1, %v1454_v60 }
 0xa59   : > { %1943 = shalt.err (!%p1940_p7)
}
 0xa5a   : > { %s1944_s3 = scalar_lea.hbm %s2381_s16, 256  ;;  %s1948_s19 = scalar_lea.hbm %s2453_s13, 1024 }
 0xa5b   : > { %p1945_p9 = scmp.ne.s32.totalorder %s2381_s16, %s1944_s3  ;;  %p1949_p12 = scmp.lt.u32.totalorder %s2381_s16, %s2453_s13 }
 0xa5c   : > { %p1950_p13 = scmp.lt.u32.totalorder %s1948_s19, %s1944_s3  ;;  %p1952_p1 = scmp.lt.u32.totalorder %s1944_s3, %s2381_s16 }
 0xa5d   : > { %p1946_p10 = pnand %p1945_p9, %p2157_p3 }
 0xa5e   : > { %p1951_p0 = por %p1950_p13, %p1949_p12 }
 0xa5f   : > { %p1947_p11 = pneg %p1946_p10 }
 0xa60   : > { %p1953_p2 = por %p1952_p1, %p1951_p0 }
 0xa62   : > { %p1954_p4 = pnand %p1953_p2, %p1947_p11 }
 0xa64   : > { %1957 = shalt.err (!%p1954_p4)
}
 0xa65   : > { %s2035_s29 = smov 128   ;;  %s2472_s30 = smov 8  }
 0xa66   : > { %1777 = dma.vmem_to_hbm [thread:$0]  (%p2157_p3), %s2384_s28, 256, %s2381_s16, %s2387_s23, %s2035_s29, %s2035_s29, %s2472_s30  }
 0xa67 PF: > { %s2473_s17 = sld [smem:[#allocation5_spill]]  ;;  %p1783_p5 = scmp.ge.s32.totalorder %s2024_s15, 2 }
 0xa69   : > { %p1780_p6 = pnand %p1783_p5, %p2166_p8 }
 0xa6d   : > { %s1488_s24 = sand.u32 1, %s2473_s17  }
 0xa6e   : > { %s1489_s27 = scalar_lea.sflag [#allocation3], %s1488_s24 }
 0xa6f   : > { %1991 = dma.done.wait (!%p1780_p6), %s1489_s27, 256  }
 0xa70   : > { %1993 = vsyncadd (!%p1780_p6), %s1489_s27, 4294967040  ;;  %s26_s15 = sadd.s32 1, %s2024_s15   ;;  %s2474_s21 = sld [smem:[#allocation6_spill]] }
 0xa71   : > { %p23_p7 = scmp.ge.s32.totalorder %s26_s15, 6   ;;  %s2475_s27 = sld [smem:[#allocation11_spill]] }
 0xa72   : > { %s2476_s28 = sld [smem:[#allocation7_spill]]  ;;  %s2477_s29 = sld [smem:[#allocation8_spill]] }
 0xa73   : > { %s2478_s30 = sld [smem:[#allocation9_spill]]  ;;  %s2479_s14 = sld [smem:[#allocation10_spill]] }
 0xa74   : > { %s2480_s25 = smov %s2000_s26  ;;  %25 = sbr.rel (!%p23_p7) target bundleno = 7 (0x7), region = 119 }
 0xa76   : > { %s2481_s26 = smov %s2474_s21 }
 0xa7b   :  { %1494 = vsyncpa [#allocation3], 1 }
 0xa7c   :  { %1496 = vsyncpa [#allocation3 + $0x1], 1 }

</bundles_post_ra>
